<compile_context>
chip_gen: v7x
topology: tpu7x:2x2x1
jax: 0.10.0
libtpu: 0.0.40
codegen_flags: <defaults>
</compile_context>

<pallas_src>
import functools

import jax
import jax.numpy as jnp
from jax.experimental import pallas as pl
from jax.experimental.pallas import tpu as pltpu


def _round_up(n, m):
    return ((n + m - 1) // m) * m


# ------------------------------ Pallas kernel -------------------------------

def _fused_lstm_fc_kernel(*refs, num_layers, seq_len, batch_tile, hidden,
                          proj_chunk, mxu_dtype):
    """All LSTM layers + FC head for one batch tile.

    refs (positional):
      inputs : x (T*B, Din),
               [w_ih (Din_l, GW), w_hh (H, GW), b (1, GW)] * num_layers,
               fc_w (H, 128) column-replicated, fc_b (1, 128)
      outputs: out (B, 128)       lane-dense; column 0 is the FC result
      scratch: seq_scr (T*B, H)   inter-layer hidden sequence
               pre_scr (T*B, GW)  hoisted x @ W_ih + b
    GW = round_up(4*H, 128); gate g lives in lanes [g*H, (g+1)*H).
    """
    H = hidden
    B = batch_tile
    T = seq_len

    x_ref = refs[0]
    layer_refs = refs[1:1 + 3 * num_layers]
    fc_w_ref = refs[1 + 3 * num_layers]
    fc_b_ref = refs[2 + 3 * num_layers]
    out_ref = refs[3 + 3 * num_layers]
    seq_scr = refs[4 + 3 * num_layers]
    pre_scr = refs[5 + 3 * num_layers]

    h_last = None
    for l in range(num_layers):
        w_ih_ref = layer_refs[3 * l + 0]
        w_hh_ref = layer_refs[3 * l + 1]
        b_ref = layer_refs[3 * l + 2]
        src_ref = x_ref if l == 0 else seq_scr

        # --- hoisted input projection + bias, chunked over time -------------
        # One MXU matmul per chunk, off the serial critical path; writing
        # chunk-by-chunk keeps vreg pressure bounded (no giant live value).
        for t0 in range(0, T, proj_chunk):
            tc = min(proj_chunk, T - t0)
            r0, nrows = t0 * B, tc * B
            xs = src_ref[r0:r0 + nrows, :]
            pre = jnp.dot(xs.astype(mxu_dtype), w_ih_ref[...],
                          preferred_element_type=jnp.float32)
            pre_scr[r0:r0 + nrows, :] = pre + b_ref[...]

        write_seq = l < num_layers - 1   # last layer only needs h_T

        def step(t, carry, w_hh_ref=w_hh_ref, write_seq=write_seq):
            h, c = carry
            row = pl.multiple_of(t * B, B)
            # Serial critical path: one (B, H) @ (H, 4H) matmul + gate math.
            # TODO(synk): hold W_hh resident in the MXU across the time loop
            # (matmul_push_rhs once per layer, acc/pop per step).
            gates = pre_scr[pl.ds(row, B), :] + jnp.dot(
                h.astype(mxu_dtype), w_hh_ref[...],
                preferred_element_type=jnp.float32)
            # Two full-width EUP passes over the packed 4H-lane block, then
            # per-gate lane slices (XLU realignment, idle slot).
            sg = jax.nn.sigmoid(gates)
            th = jnp.tanh(gates)
            i = sg[:, 0 * H:1 * H]
            f = sg[:, 1 * H:2 * H]
            g = th[:, 2 * H:3 * H]
            o = sg[:, 3 * H:4 * H]
            c_new = f * c + i * g
            h_new = o * jnp.tanh(c_new)
            if write_seq:
                seq_scr[pl.ds(row, B), :] = h_new
            return (h_new, c_new)

        z = jnp.zeros((B, H), jnp.float32)
        h_last, _ = jax.lax.fori_loop(0, T, step, (z, z),
                                      unroll=min(T, 8))

    # --- FC head: lane-dense (B, 128) output via column-replicated weight ---
    out_ref[...] = (jnp.dot(h_last.astype(mxu_dtype), fc_w_ref[...],
                            preferred_element_type=jnp.float32)
                    + fc_b_ref[...])


# ------------------------------- wrapper -------------------------------------

@jax.jit
def lstm_forward(packed, x):
    """Equivalent of the PyTorch LSTM.forward.  x: (B, T, input_size) -> (B, 1)."""
    B, T, din = x.shape
    num_layers = len(packed["layers"])
    H = packed["fc_w"].shape[0]
    GW = packed["layers"][0]["w_ih"].shape[1]
    mxu_dtype = packed["layers"][0]["w_ih"].dtype

    B_TILE = 8                                    # one sublane tile per program
    nb = (B + B_TILE - 1) // B_TILE
    B_pad = nb * B_TILE
    proj_chunk = max(1, min(T, 256 // B_TILE))    # >=~256 rows per proj matmul

    # Layout plumbing in the wrapper: time-major, pad batch, group rows per
    # batch tile so the kernel never reshapes a materialized value.
    x_tm = jnp.transpose(x, (1, 0, 2)).astype(jnp.float32)        # (T, B, Din)
    x_tm = jnp.pad(x_tm, ((0, 0), (0, B_pad - B), (0, 0)))
    x_g = (x_tm.reshape(T, nb, B_TILE, din)
               .transpose(1, 0, 2, 3)
               .reshape(nb, T * B_TILE, din))                     # per-tile rows

    args = [x_g]
    in_specs = [pl.BlockSpec((None, T * B_TILE, din), lambda g: (g, 0, 0))]
    for lp in packed["layers"]:
        for name in ("w_ih", "w_hh", "b"):
            w = lp[name]
            args.append(w)
            in_specs.append(pl.BlockSpec(w.shape, lambda g: (0, 0)))
    for w in (packed["fc_w"], packed["fc_b"]):
        args.append(w)
        in_specs.append(pl.BlockSpec(w.shape, lambda g: (0, 0)))

    scratch_shapes = [pltpu.VMEM((T * B_TILE, H), jnp.float32),   # seq_scr
                      pltpu.VMEM((T * B_TILE, GW), jnp.float32)]  # pre_scr

    # Explicit VMEM budget with headroom (default scoped limit is well below
    # physical once scratch grows), capped to v7x's 64 MiB.
    weight_bytes = sum(int(a.size) * a.dtype.itemsize for a in args[1:])
    scratch_bytes = (T * B_TILE * max(H, 128) + T * B_TILE * GW) * 4
    io_bytes = (T * B_TILE * max(din, 128) + B_TILE * 128) * 4
    vmem_limit = int(max(16 << 20,
                         min(64 << 20,
                             4 * (weight_bytes + scratch_bytes + io_bytes))))

    kernel = functools.partial(
        _fused_lstm_fc_kernel, num_layers=num_layers, seq_len=T,
        batch_tile=B_TILE, hidden=H, proj_chunk=proj_chunk,
        mxu_dtype=mxu_dtype)

    out = pl.pallas_call(
        kernel,
        grid=(nb,),
        out_shape=jax.ShapeDtypeStruct((B_pad, 128), jnp.float32),
        in_specs=in_specs,
        out_specs=pl.BlockSpec((B_TILE, 128), lambda g: (g, 0)),
        scratch_shapes=scratch_shapes,
        compiler_params=pltpu.CompilerParams(
            dimension_semantics=("parallel",),      # v7x: split batch over 2 TCs
            vmem_limit_bytes=vmem_limit),
    )(*args)
    return out[:B, :1]


# ----------------- parameter init (PyTorch layout) + packing -----------------

def init_params(key, input_size, hidden_size, num_layers):
    k = 1.0 / (hidden_size ** 0.5)
    layers = []
    for l in range(num_layers):
        din = input_size if l == 0 else hidden_size
        key, k1, k2, k3, k4 = jax.random.split(key, 5)
        layers.append({
            "w_ih": jax.random.uniform(k1, (4 * hidden_size, din),
                                       minval=-k, maxval=k, dtype=jnp.float32),
            "w_hh": jax.random.uniform(k2, (4 * hidden_size, hidden_size),
                                       minval=-k, maxval=k, dtype=jnp.float32),
            "b_ih": jax.random.uniform(k3, (4 * hidden_size,),
                                       minval=-k, maxval=k, dtype=jnp.float32),
            "b_hh": jax.random.uniform(k4, (4 * hidden_size,),
                                       minval=-k, maxval=k, dtype=jnp.float32),
        })
    key, k5, k6 = jax.random.split(key, 3)
    fc_w = jax.random.uniform(k5, (1, hidden_size),
                              minval=-k, maxval=k, dtype=jnp.float32)
    fc_b = jax.random.uniform(k6, (1,), minval=-k, maxval=k, dtype=jnp.float32)
    return {"layers": layers, "fc_w": fc_w, "fc_b": fc_b}


def pack_params(raw, input_size, hidden_size, mxu_dtype=jnp.float32):
    """Transpose weights into a packed [i|f|g|o] 4*H-lane gate block.

    Gate g occupies lanes [g*H, (g+1)*H); total width padded to a multiple of
    128 lanes.  MXU operands (w_ih, w_hh, fc_w) may be stored bf16; biases and
    everything added post-matmul stay f32.
    """
    H = hidden_size
    GW = _round_up(4 * H, 128)
    layers = []
    for l, lp in enumerate(raw["layers"]):
        din = input_size if l == 0 else H
        w_ih = jnp.zeros((din, GW), jnp.float32)
        w_hh = jnp.zeros((H, GW), jnp.float32)
        b = jnp.zeros((1, GW), jnp.float32)
        b_sum = lp["b_ih"] + lp["b_hh"]
        for g in range(4):                              # gate order i, f, g, o
            w_ih = w_ih.at[:, g * H:(g + 1) * H].set(lp["w_ih"][g * H:(g + 1) * H, :].T)
            w_hh = w_hh.at[:, g * H:(g + 1) * H].set(lp["w_hh"][g * H:(g + 1) * H, :].T)
            b = b.at[0, g * H:(g + 1) * H].set(b_sum[g * H:(g + 1) * H])
        layers.append({"w_ih": w_ih.astype(mxu_dtype),
                       "w_hh": w_hh.astype(mxu_dtype),
                       "b": b})
    fc_w = jnp.tile(raw["fc_w"].T, (1, 128)).astype(mxu_dtype)   # (H, 128), lane-replicated
    fc_b = jnp.full((1, 128), raw["fc_b"][0], dtype=jnp.float32)
    return {"layers": layers, "fc_w": fc_w, "fc_b": fc_b}


# --------------------------- pure-JAX reference -------------------------------

def lstm_reference(raw, x, hidden_size):
    B = x.shape[0]
    H = hidden_size
    h_seq = x.astype(jnp.float32)
    for lp in raw["layers"]:
        w_ih_t, w_hh_t, b = lp["w_ih"].T, lp["w_hh"].T, lp["b_ih"] + lp["b_hh"]

        def step(carry, x_t, w_ih_t=w_ih_t, w_hh_t=w_hh_t, b=b):
            h, c = carry
            gates = x_t @ w_ih_t + h @ w_hh_t + b
            i = jax.nn.sigmoid(gates[:, :H])
            f = jax.nn.sigmoid(gates[:, H:2 * H])
            g = jnp.tanh(gates[:, 2 * H:3 * H])
            o = jax.nn.sigmoid(gates[:, 3 * H:])
            c = f * c + i * g
            h = o * jnp.tanh(c)
            return (h, c), h

        h0 = jnp.zeros((B, H), jnp.float32)
        c0 = jnp.zeros((B, H), jnp.float32)
        (_, _), hs = jax.lax.scan(step, (h0, c0), jnp.transpose(h_seq, (1, 0, 2)))
        h_seq = jnp.transpose(hs, (1, 0, 2))
    return h_seq[:, -1, :] @ raw["fc_w"].T + raw["fc_b"]


# ---------------------------------- main --------------------------------------

if __name__ == "__main__":
    INPUT_SIZE = 4
    HIDDEN_SIZE = 32
    NUM_LAYERS = 2
    BATCH = 4
    SEQ = 8

    key = jax.random.PRNGKey(0)
    key, pkey, xkey = jax.random.split(key, 3)
    raw_params = init_params(pkey, INPUT_SIZE, HIDDEN_SIZE, NUM_LAYERS)
    x = jax.random.normal(xkey, (BATCH, SEQ, INPUT_SIZE), dtype=jnp.float32)

    # --- exact f32 path ------------------------------------------------------
    packed_f32 = pack_params(raw_params, INPUT_SIZE, HIDDEN_SIZE, jnp.float32)
    out_f32 = jax.block_until_ready(lstm_forward(packed_f32, x))
    ref = lstm_reference(raw_params, x, HIDDEN_SIZE)
    assert out_f32.shape == (BATCH, 1), out_f32.shape
    assert jnp.allclose(out_f32, ref, atol=1e-4, rtol=1e-4), (out_f32, ref)

    # --- bf16-MXU path (weights quantized to bf16, f32 accumulation) ---------
    packed_bf16 = pack_params(raw_params, INPUT_SIZE, HIDDEN_SIZE, jnp.bfloat16)
    out_bf16 = jax.block_until_ready(lstm_forward(packed_bf16, x))
    raw_q = jax.tree_util.tree_map(
        lambda a: a.astype(jnp.bfloat16).astype(jnp.float32), raw_params)
    ref_q = lstm_reference(raw_q, x, HIDDEN_SIZE)
    assert out_bf16.shape == (BATCH, 1), out_bf16.shape
    assert jnp.allclose(out_bf16, ref_q, atol=2e-2, rtol=2e-2), (out_bf16, ref_q)

    print("KERNEL_OK")
</pallas_src>

<mosaic_0001>
module attributes {stable_mosaic.version = 11 : i64} {
  func.func @_fused_lstm_fc_kernel(%arg0: i32, %arg1: memref<1x64x4xf32, #tpu.memory_space<vmem>>, %arg2: memref<4x128xf32, #tpu.memory_space<vmem>>, %arg3: memref<32x128xf32, #tpu.memory_space<vmem>>, %arg4: memref<1x128xf32, #tpu.memory_space<vmem>>, %arg5: memref<32x128xf32, #tpu.memory_space<vmem>>, %arg6: memref<32x128xf32, #tpu.memory_space<vmem>>, %arg7: memref<1x128xf32, #tpu.memory_space<vmem>>, %arg8: memref<32x128xf32, #tpu.memory_space<vmem>>, %arg9: memref<1x128xf32, #tpu.memory_space<vmem>>, %arg10: memref<8x128xf32, #tpu.memory_space<vmem>>, %arg11: memref<64x32xf32, #tpu.memory_space<vmem>>, %arg12: memref<64x128xf32, #tpu.memory_space<vmem>>) attributes {dimension_semantics = [#tpu.dimension_semantics<parallel>], iteration_bounds = array<i64: 1>, scalar_prefetch = 0 : i64, scratch_operands = 2 : i64, tpu.core_type = #tpu.core_type<tc>, window_params = [{transform_indices = @transform_0, window_bounds = array<i64: 1, 64, 4>}, {pipeline_mode = #tpu.pipeline_mode<synchronous>, transform_indices = @transform_1, window_bounds = array<i64: 4, 128>}, {pipeline_mode = #tpu.pipeline_mode<synchronous>, transform_indices = @transform_2, window_bounds = array<i64: 32, 128>}, {pipeline_mode = #tpu.pipeline_mode<synchronous>, transform_indices = @transform_3, window_bounds = array<i64: 1, 128>}, {pipeline_mode = #tpu.pipeline_mode<synchronous>, transform_indices = @transform_4, window_bounds = array<i64: 32, 128>}, {pipeline_mode = #tpu.pipeline_mode<synchronous>, transform_indices = @transform_5, window_bounds = array<i64: 32, 128>}, {pipeline_mode = #tpu.pipeline_mode<synchronous>, transform_indices = @transform_6, window_bounds = array<i64: 1, 128>}, {pipeline_mode = #tpu.pipeline_mode<synchronous>, transform_indices = @transform_7, window_bounds = array<i64: 32, 128>}, {pipeline_mode = #tpu.pipeline_mode<synchronous>, transform_indices = @transform_8, window_bounds = array<i64: 1, 128>}, {transform_indices = @transform_9, window_bounds = array<i64: 8, 128>}]} {
    %c0 = arith.constant 0 : index
    %c0_0 = arith.constant 0 : index
    %c0_1 = arith.constant 0 : index
    %0 = vector.load %arg1[%c0, %c0_0, %c0_1] : memref<1x64x4xf32, #tpu.memory_space<vmem>>, vector<1x64x4xf32>
    %1 = vector.shape_cast %0 : vector<1x64x4xf32> to vector<64x4xf32>
    %c0_2 = arith.constant 0 : index
    %c0_3 = arith.constant 0 : index
    %2 = vector.load %arg2[%c0_2, %c0_3] : memref<4x128xf32, #tpu.memory_space<vmem>>, vector<4x128xf32>
    %cst = arith.constant dense<0.000000e+00> : vector<64x128xf32>
    %3 = tpu.matmul %1, %2, %cst {dimension_numbers = #tpu.dot_dimension_numbers<[1], [0], [0], [1], [0, 0, 1, 1], [], []>} : vector<64x4xf32>, vector<4x128xf32>, vector<64x128xf32> -> vector<64x128xf32>
    %c0_4 = arith.constant 0 : index
    %c0_5 = arith.constant 0 : index
    %4 = vector.load %arg4[%c0_4, %c0_5] : memref<1x128xf32, #tpu.memory_space<vmem>>, vector<1x128xf32>
    %5 = vector.broadcast %4 : vector<1x128xf32> to vector<64x128xf32>
    %6 = arith.addf %3, %5 : vector<64x128xf32>
    %c0_6 = arith.constant 0 : index
    %c0_7 = arith.constant 0 : index
    %7 = vector.load %arg12[%c0_6, %c0_7] : memref<64x128xf32, #tpu.memory_space<vmem>>, vector<64x128xf32>
    tpu.vector_store %arg12[%c0_6, %c0_7], %6 {strides = array<i32>} : memref<64x128xf32, #tpu.memory_space<vmem>>, vector<64x128xf32>,
    %cst_8 = arith.constant 0.000000e+00 : f32
    %8 = vector.broadcast %cst_8 : f32 to vector<8x32xf32>
    %c0_i32 = arith.constant 0 : i32
    %c8_i32 = arith.constant 8 : i32
    %9 = arith.muli %c0_i32, %c8_i32 : i32
    %10 = tpu.assume_multiple %9, 8 : i32
    %11 = arith.index_cast %10 : i32 to index
    %c0_9 = arith.constant 0 : index
    %12 = vector.load %arg12[%11, %c0_9] : memref<64x128xf32, #tpu.memory_space<vmem>>, vector<8x128xf32>
    %c0_10 = arith.constant 0 : index
    %c0_11 = arith.constant 0 : index
    %13 = vector.load %arg3[%c0_10, %c0_11] : memref<32x128xf32, #tpu.memory_space<vmem>>, vector<32x128xf32>
    %cst_12 = arith.constant dense<0.000000e+00> : vector<8x128xf32>
    %14 = tpu.matmul %8, %13, %cst_12 {dimension_numbers = #tpu.dot_dimension_numbers<[1], [0], [0], [1], [0, 0, 1, 1], [], []>} : vector<8x32xf32>, vector<32x128xf32>, vector<8x128xf32> -> vector<8x128xf32>
    %15 = arith.addf %12, %14 : vector<8x128xf32>
    %16 = arith.negf %15 : vector<8x128xf32>
    %17 = math.exp %16 : vector<8x128xf32>
    %cst_13 = arith.constant 1.000000e+00 : f32
    %18 = vector.broadcast %cst_13 : f32 to vector<8x128xf32>
    %19 = arith.addf %18, %17 : vector<8x128xf32>
    %20 = arith.divf %18, %19 : vector<8x128xf32>
    %21 = math.tanh %15 : vector<8x128xf32>
    %22 = vector.extract_strided_slice %20 {offsets = [0, 0], sizes = [8, 32], strides = [1, 1]} : vector<8x128xf32> to vector<8x32xf32>
    %23 = vector.extract_strided_slice %20 {offsets = [0, 32], sizes = [8, 32], strides = [1, 1]} : vector<8x128xf32> to vector<8x32xf32>
    %24 = vector.extract_strided_slice %21 {offsets = [0, 64], sizes = [8, 32], strides = [1, 1]} : vector<8x128xf32> to vector<8x32xf32>
    %25 = vector.extract_strided_slice %20 {offsets = [0, 96], sizes = [8, 32], strides = [1, 1]} : vector<8x128xf32> to vector<8x32xf32>
    %26 = arith.mulf %23, %8 : vector<8x32xf32>
    %27 = arith.mulf %22, %24 : vector<8x32xf32>
    %28 = arith.addf %26, %27 : vector<8x32xf32>
    %29 = math.tanh %28 : vector<8x32xf32>
    %30 = arith.mulf %25, %29 : vector<8x32xf32>
    %31 = arith.index_cast %10 : i32 to index
    %c0_14 = arith.constant 0 : index
    %32 = vector.load %arg11[%31, %c0_14] : memref<64x32xf32, #tpu.memory_space<vmem>>, vector<8x32xf32>
    tpu.vector_store %arg11[%31, %c0_14], %30 {strides = array<i32>} : memref<64x32xf32, #tpu.memory_space<vmem>>, vector<8x32xf32>,
    %c1_i32 = arith.constant 1 : i32
    %c8_i32_15 = arith.constant 8 : i32
    %33 = arith.muli %c1_i32, %c8_i32_15 : i32
    %34 = tpu.assume_multiple %33, 8 : i32
    %35 = arith.index_cast %34 : i32 to index
    %c0_16 = arith.constant 0 : index
    %36 = vector.load %arg12[%35, %c0_16] : memref<64x128xf32, #tpu.memory_space<vmem>>, vector<8x128xf32>
    %c0_17 = arith.constant 0 : index
    %c0_18 = arith.constant 0 : index
    %37 = vector.load %arg3[%c0_17, %c0_18] : memref<32x128xf32, #tpu.memory_space<vmem>>, vector<32x128xf32>
    %cst_19 = arith.constant dense<0.000000e+00> : vector<8x128xf32>
    %38 = tpu.matmul %30, %37, %cst_19 {dimension_numbers = #tpu.dot_dimension_numbers<[1], [0], [0], [1], [0, 0, 1, 1], [], []>} : vector<8x32xf32>, vector<32x128xf32>, vector<8x128xf32> -> vector<8x128xf32>
    %39 = arith.addf %36, %38 : vector<8x128xf32>
    %40 = arith.negf %39 : vector<8x128xf32>
    %41 = math.exp %40 : vector<8x128xf32>
    %cst_20 = arith.constant 1.000000e+00 : f32
    %42 = vector.broadcast %cst_20 : f32 to vector<8x128xf32>
    %43 = arith.addf %42, %41 : vector<8x128xf32>
    %44 = arith.divf %42, %43 : vector<8x128xf32>
    %45 = math.tanh %39 : vector<8x128xf32>
    %46 = vector.extract_strided_slice %44 {offsets = [0, 0], sizes = [8, 32], strides = [1, 1]} : vector<8x128xf32> to vector<8x32xf32>
    %47 = vector.extract_strided_slice %44 {offsets = [0, 32], sizes = [8, 32], strides = [1, 1]} : vector<8x128xf32> to vector<8x32xf32>
    %48 = vector.extract_strided_slice %45 {offsets = [0, 64], sizes = [8, 32], strides = [1, 1]} : vector<8x128xf32> to vector<8x32xf32>
    %49 = vector.extract_strided_slice %44 {offsets = [0, 96], sizes = [8, 32], strides = [1, 1]} : vector<8x128xf32> to vector<8x32xf32>
    %50 = arith.mulf %47, %28 : vector<8x32xf32>
    %51 = arith.mulf %46, %48 : vector<8x32xf32>
    %52 = arith.addf %50, %51 : vector<8x32xf32>
    %53 = math.tanh %52 : vector<8x32xf32>
    %54 = arith.mulf %49, %53 : vector<8x32xf32>
    %55 = arith.index_cast %34 : i32 to index
    %c0_21 = arith.constant 0 : index
    %56 = vector.load %arg11[%55, %c0_21] : memref<64x32xf32, #tpu.memory_space<vmem>>, vector<8x32xf32>
    tpu.vector_store %arg11[%55, %c0_21], %54 {strides = array<i32>} : memref<64x32xf32, #tpu.memory_space<vmem>>, vector<8x32xf32>,
    %c2_i32 = arith.constant 2 : i32
    %c8_i32_22 = arith.constant 8 : i32
    %57 = arith.muli %c2_i32, %c8_i32_22 : i32
    %58 = tpu.assume_multiple %57, 8 : i32
    %59 = arith.index_cast %58 : i32 to index
    %c0_23 = arith.constant 0 : index
    %60 = vector.load %arg12[%59, %c0_23] : memref<64x128xf32, #tpu.memory_space<vmem>>, vector<8x128xf32>
    %c0_24 = arith.constant 0 : index
    %c0_25 = arith.constant 0 : index
    %61 = vector.load %arg3[%c0_24, %c0_25] : memref<32x128xf32, #tpu.memory_space<vmem>>, vector<32x128xf32>
    %cst_26 = arith.constant dense<0.000000e+00> : vector<8x128xf32>
    %62 = tpu.matmul %54, %61, %cst_26 {dimension_numbers = #tpu.dot_dimension_numbers<[1], [0], [0], [1], [0, 0, 1, 1], [], []>} : vector<8x32xf32>, vector<32x128xf32>, vector<8x128xf32> -> vector<8x128xf32>
    %63 = arith.addf %60, %62 : vector<8x128xf32>
    %64 = arith.negf %63 : vector<8x128xf32>
    %65 = math.exp %64 : vector<8x128xf32>
    %cst_27 = arith.constant 1.000000e+00 : f32
    %66 = vector.broadcast %cst_27 : f32 to vector<8x128xf32>
    %67 = arith.addf %66, %65 : vector<8x128xf32>
    %68 = arith.divf %66, %67 : vector<8x128xf32>
    %69 = math.tanh %63 : vector<8x128xf32>
    %70 = vector.extract_strided_slice %68 {offsets = [0, 0], sizes = [8, 32], strides = [1, 1]} : vector<8x128xf32> to vector<8x32xf32>
    %71 = vector.extract_strided_slice %68 {offsets = [0, 32], sizes = [8, 32], strides = [1, 1]} : vector<8x128xf32> to vector<8x32xf32>
    %72 = vector.extract_strided_slice %69 {offsets = [0, 64], sizes = [8, 32], strides = [1, 1]} : vector<8x128xf32> to vector<8x32xf32>
    %73 = vector.extract_strided_slice %68 {offsets = [0, 96], sizes = [8, 32], strides = [1, 1]} : vector<8x128xf32> to vector<8x32xf32>
    %74 = arith.mulf %71, %52 : vector<8x32xf32>
    %75 = arith.mulf %70, %72 : vector<8x32xf32>
    %76 = arith.addf %74, %75 : vector<8x32xf32>
    %77 = math.tanh %76 : vector<8x32xf32>
    %78 = arith.mulf %73, %77 : vector<8x32xf32>
    %79 = arith.index_cast %58 : i32 to index
    %c0_28 = arith.constant 0 : index
    %80 = vector.load %arg11[%79, %c0_28] : memref<64x32xf32, #tpu.memory_space<vmem>>, vector<8x32xf32>
    tpu.vector_store %arg11[%79, %c0_28], %78 {strides = array<i32>} : memref<64x32xf32, #tpu.memory_space<vmem>>, vector<8x32xf32>,
    %c3_i32 = arith.constant 3 : i32
    %c8_i32_29 = arith.constant 8 : i32
    %81 = arith.muli %c3_i32, %c8_i32_29 : i32
    %82 = tpu.assume_multiple %81, 8 : i32
    %83 = arith.index_cast %82 : i32 to index
    %c0_30 = arith.constant 0 : index
    %84 = vector.load %arg12[%83, %c0_30] : memref<64x128xf32, #tpu.memory_space<vmem>>, vector<8x128xf32>
    %c0_31 = arith.constant 0 : index
    %c0_32 = arith.constant 0 : index
    %85 = vector.load %arg3[%c0_31, %c0_32] : memref<32x128xf32, #tpu.memory_space<vmem>>, vector<32x128xf32>
    %cst_33 = arith.constant dense<0.000000e+00> : vector<8x128xf32>
    %86 = tpu.matmul %78, %85, %cst_33 {dimension_numbers = #tpu.dot_dimension_numbers<[1], [0], [0], [1], [0, 0, 1, 1], [], []>} : vector<8x32xf32>, vector<32x128xf32>, vector<8x128xf32> -> vector<8x128xf32>
    %87 = arith.addf %84, %86 : vector<8x128xf32>
    %88 = arith.negf %87 : vector<8x128xf32>
    %89 = math.exp %88 : vector<8x128xf32>
    %cst_34 = arith.constant 1.000000e+00 : f32
    %90 = vector.broadcast %cst_34 : f32 to vector<8x128xf32>
    %91 = arith.addf %90, %89 : vector<8x128xf32>
    %92 = arith.divf %90, %91 : vector<8x128xf32>
    %93 = math.tanh %87 : vector<8x128xf32>
    %94 = vector.extract_strided_slice %92 {offsets = [0, 0], sizes = [8, 32], strides = [1, 1]} : vector<8x128xf32> to vector<8x32xf32>
    %95 = vector.extract_strided_slice %92 {offsets = [0, 32], sizes = [8, 32], strides = [1, 1]} : vector<8x128xf32> to vector<8x32xf32>
    %96 = vector.extract_strided_slice %93 {offsets = [0, 64], sizes = [8, 32], strides = [1, 1]} : vector<8x128xf32> to vector<8x32xf32>
    %97 = vector.extract_strided_slice %92 {offsets = [0, 96], sizes = [8, 32], strides = [1, 1]} : vector<8x128xf32> to vector<8x32xf32>
    %98 = arith.mulf %95, %76 : vector<8x32xf32>
    %99 = arith.mulf %94, %96 : vector<8x32xf32>
    %100 = arith.addf %98, %99 : vector<8x32xf32>
    %101 = math.tanh %100 : vector<8x32xf32>
    %102 = arith.mulf %97, %101 : vector<8x32xf32>
    %103 = arith.index_cast %82 : i32 to index
    %c0_35 = arith.constant 0 : index
    %104 = vector.load %arg11[%103, %c0_35] : memref<64x32xf32, #tpu.memory_space<vmem>>, vector<8x32xf32>
    tpu.vector_store %arg11[%103, %c0_35], %102 {strides = array<i32>} : memref<64x32xf32, #tpu.memory_space<vmem>>, vector<8x32xf32>,
    %c4_i32 = arith.constant 4 : i32
    %c8_i32_36 = arith.constant 8 : i32
    %105 = arith.muli %c4_i32, %c8_i32_36 : i32
    %106 = tpu.assume_multiple %105, 8 : i32
    %107 = arith.index_cast %106 : i32 to index
    %c0_37 = arith.constant 0 : index
    %108 = vector.load %arg12[%107, %c0_37] : memref<64x128xf32, #tpu.memory_space<vmem>>, vector<8x128xf32>
    %c0_38 = arith.constant 0 : index
    %c0_39 = arith.constant 0 : index
    %109 = vector.load %arg3[%c0_38, %c0_39] : memref<32x128xf32, #tpu.memory_space<vmem>>, vector<32x128xf32>
    %cst_40 = arith.constant dense<0.000000e+00> : vector<8x128xf32>
    %110 = tpu.matmul %102, %109, %cst_40 {dimension_numbers = #tpu.dot_dimension_numbers<[1], [0], [0], [1], [0, 0, 1, 1], [], []>} : vector<8x32xf32>, vector<32x128xf32>, vector<8x128xf32> -> vector<8x128xf32>
    %111 = arith.addf %108, %110 : vector<8x128xf32>
    %112 = arith.negf %111 : vector<8x128xf32>
    %113 = math.exp %112 : vector<8x128xf32>
    %cst_41 = arith.constant 1.000000e+00 : f32
    %114 = vector.broadcast %cst_41 : f32 to vector<8x128xf32>
    %115 = arith.addf %114, %113 : vector<8x128xf32>
    %116 = arith.divf %114, %115 : vector<8x128xf32>
    %117 = math.tanh %111 : vector<8x128xf32>
    %118 = vector.extract_strided_slice %116 {offsets = [0, 0], sizes = [8, 32], strides = [1, 1]} : vector<8x128xf32> to vector<8x32xf32>
    %119 = vector.extract_strided_slice %116 {offsets = [0, 32], sizes = [8, 32], strides = [1, 1]} : vector<8x128xf32> to vector<8x32xf32>
    %120 = vector.extract_strided_slice %117 {offsets = [0, 64], sizes = [8, 32], strides = [1, 1]} : vector<8x128xf32> to vector<8x32xf32>
    %121 = vector.extract_strided_slice %116 {offsets = [0, 96], sizes = [8, 32], strides = [1, 1]} : vector<8x128xf32> to vector<8x32xf32>
    %122 = arith.mulf %119, %100 : vector<8x32xf32>
    %123 = arith.mulf %118, %120 : vector<8x32xf32>
    %124 = arith.addf %122, %123 : vector<8x32xf32>
    %125 = math.tanh %124 : vector<8x32xf32>
    %126 = arith.mulf %121, %125 : vector<8x32xf32>
    %127 = arith.index_cast %106 : i32 to index
    %c0_42 = arith.constant 0 : index
    %128 = vector.load %arg11[%127, %c0_42] : memref<64x32xf32, #tpu.memory_space<vmem>>, vector<8x32xf32>
    tpu.vector_store %arg11[%127, %c0_42], %126 {strides = array<i32>} : memref<64x32xf32, #tpu.memory_space<vmem>>, vector<8x32xf32>,
    %c5_i32 = arith.constant 5 : i32
    %c8_i32_43 = arith.constant 8 : i32
    %129 = arith.muli %c5_i32, %c8_i32_43 : i32
    %130 = tpu.assume_multiple %129, 8 : i32
    %131 = arith.index_cast %130 : i32 to index
    %c0_44 = arith.constant 0 : index
    %132 = vector.load %arg12[%131, %c0_44] : memref<64x128xf32, #tpu.memory_space<vmem>>, vector<8x128xf32>
    %c0_45 = arith.constant 0 : index
    %c0_46 = arith.constant 0 : index
    %133 = vector.load %arg3[%c0_45, %c0_46] : memref<32x128xf32, #tpu.memory_space<vmem>>, vector<32x128xf32>
    %cst_47 = arith.constant dense<0.000000e+00> : vector<8x128xf32>
    %134 = tpu.matmul %126, %133, %cst_47 {dimension_numbers = #tpu.dot_dimension_numbers<[1], [0], [0], [1], [0, 0, 1, 1], [], []>} : vector<8x32xf32>, vector<32x128xf32>, vector<8x128xf32> -> vector<8x128xf32>
    %135 = arith.addf %132, %134 : vector<8x128xf32>
    %136 = arith.negf %135 : vector<8x128xf32>
    %137 = math.exp %136 : vector<8x128xf32>
    %cst_48 = arith.constant 1.000000e+00 : f32
    %138 = vector.broadcast %cst_48 : f32 to vector<8x128xf32>
    %139 = arith.addf %138, %137 : vector<8x128xf32>
    %140 = arith.divf %138, %139 : vector<8x128xf32>
    %141 = math.tanh %135 : vector<8x128xf32>
    %142 = vector.extract_strided_slice %140 {offsets = [0, 0], sizes = [8, 32], strides = [1, 1]} : vector<8x128xf32> to vector<8x32xf32>
    %143 = vector.extract_strided_slice %140 {offsets = [0, 32], sizes = [8, 32], strides = [1, 1]} : vector<8x128xf32> to vector<8x32xf32>
    %144 = vector.extract_strided_slice %141 {offsets = [0, 64], sizes = [8, 32], strides = [1, 1]} : vector<8x128xf32> to vector<8x32xf32>
    %145 = vector.extract_strided_slice %140 {offsets = [0, 96], sizes = [8, 32], strides = [1, 1]} : vector<8x128xf32> to vector<8x32xf32>
    %146 = arith.mulf %143, %124 : vector<8x32xf32>
    %147 = arith.mulf %142, %144 : vector<8x32xf32>
    %148 = arith.addf %146, %147 : vector<8x32xf32>
    %149 = math.tanh %148 : vector<8x32xf32>
    %150 = arith.mulf %145, %149 : vector<8x32xf32>
    %151 = arith.index_cast %130 : i32 to index
    %c0_49 = arith.constant 0 : index
    %152 = vector.load %arg11[%151, %c0_49] : memref<64x32xf32, #tpu.memory_space<vmem>>, vector<8x32xf32>
    tpu.vector_store %arg11[%151, %c0_49], %150 {strides = array<i32>} : memref<64x32xf32, #tpu.memory_space<vmem>>, vector<8x32xf32>,
    %c6_i32 = arith.constant 6 : i32
    %c8_i32_50 = arith.constant 8 : i32
    %153 = arith.muli %c6_i32, %c8_i32_50 : i32
    %154 = tpu.assume_multiple %153, 8 : i32
    %155 = arith.index_cast %154 : i32 to index
    %c0_51 = arith.constant 0 : index
    %156 = vector.load %arg12[%155, %c0_51] : memref<64x128xf32, #tpu.memory_space<vmem>>, vector<8x128xf32>
    %c0_52 = arith.constant 0 : index
    %c0_53 = arith.constant 0 : index
    %157 = vector.load %arg3[%c0_52, %c0_53] : memref<32x128xf32, #tpu.memory_space<vmem>>, vector<32x128xf32>
    %cst_54 = arith.constant dense<0.000000e+00> : vector<8x128xf32>
    %158 = tpu.matmul %150, %157, %cst_54 {dimension_numbers = #tpu.dot_dimension_numbers<[1], [0], [0], [1], [0, 0, 1, 1], [], []>} : vector<8x32xf32>, vector<32x128xf32>, vector<8x128xf32> -> vector<8x128xf32>
    %159 = arith.addf %156, %158 : vector<8x128xf32>
    %160 = arith.negf %159 : vector<8x128xf32>
    %161 = math.exp %160 : vector<8x128xf32>
    %cst_55 = arith.constant 1.000000e+00 : f32
    %162 = vector.broadcast %cst_55 : f32 to vector<8x128xf32>
    %163 = arith.addf %162, %161 : vector<8x128xf32>
    %164 = arith.divf %162, %163 : vector<8x128xf32>
    %165 = math.tanh %159 : vector<8x128xf32>
    %166 = vector.extract_strided_slice %164 {offsets = [0, 0], sizes = [8, 32], strides = [1, 1]} : vector<8x128xf32> to vector<8x32xf32>
    %167 = vector.extract_strided_slice %164 {offsets = [0, 32], sizes = [8, 32], strides = [1, 1]} : vector<8x128xf32> to vector<8x32xf32>
    %168 = vector.extract_strided_slice %165 {offsets = [0, 64], sizes = [8, 32], strides = [1, 1]} : vector<8x128xf32> to vector<8x32xf32>
    %169 = vector.extract_strided_slice %164 {offsets = [0, 96], sizes = [8, 32], strides = [1, 1]} : vector<8x128xf32> to vector<8x32xf32>
    %170 = arith.mulf %167, %148 : vector<8x32xf32>
    %171 = arith.mulf %166, %168 : vector<8x32xf32>
    %172 = arith.addf %170, %171 : vector<8x32xf32>
    %173 = math.tanh %172 : vector<8x32xf32>
    %174 = arith.mulf %169, %173 : vector<8x32xf32>
    %175 = arith.index_cast %154 : i32 to index
    %c0_56 = arith.constant 0 : index
    %176 = vector.load %arg11[%175, %c0_56] : memref<64x32xf32, #tpu.memory_space<vmem>>, vector<8x32xf32>
    tpu.vector_store %arg11[%175, %c0_56], %174 {strides = array<i32>} : memref<64x32xf32, #tpu.memory_space<vmem>>, vector<8x32xf32>,
    %c7_i32 = arith.constant 7 : i32
    %c8_i32_57 = arith.constant 8 : i32
    %177 = arith.muli %c7_i32, %c8_i32_57 : i32
    %178 = tpu.assume_multiple %177, 8 : i32
    %179 = arith.index_cast %178 : i32 to index
    %c0_58 = arith.constant 0 : index
    %180 = vector.load %arg12[%179, %c0_58] : memref<64x128xf32, #tpu.memory_space<vmem>>, vector<8x128xf32>
    %c0_59 = arith.constant 0 : index
    %c0_60 = arith.constant 0 : index
    %181 = vector.load %arg3[%c0_59, %c0_60] : memref<32x128xf32, #tpu.memory_space<vmem>>, vector<32x128xf32>
    %cst_61 = arith.constant dense<0.000000e+00> : vector<8x128xf32>
    %182 = tpu.matmul %174, %181, %cst_61 {dimension_numbers = #tpu.dot_dimension_numbers<[1], [0], [0], [1], [0, 0, 1, 1], [], []>} : vector<8x32xf32>, vector<32x128xf32>, vector<8x128xf32> -> vector<8x128xf32>
    %183 = arith.addf %180, %182 : vector<8x128xf32>
    %184 = arith.negf %183 : vector<8x128xf32>
    %185 = math.exp %184 : vector<8x128xf32>
    %cst_62 = arith.constant 1.000000e+00 : f32
    %186 = vector.broadcast %cst_62 : f32 to vector<8x128xf32>
    %187 = arith.addf %186, %185 : vector<8x128xf32>
    %188 = arith.divf %186, %187 : vector<8x128xf32>
    %189 = math.tanh %183 : vector<8x128xf32>
    %190 = vector.extract_strided_slice %188 {offsets = [0, 0], sizes = [8, 32], strides = [1, 1]} : vector<8x128xf32> to vector<8x32xf32>
    %191 = vector.extract_strided_slice %188 {offsets = [0, 32], sizes = [8, 32], strides = [1, 1]} : vector<8x128xf32> to vector<8x32xf32>
    %192 = vector.extract_strided_slice %189 {offsets = [0, 64], sizes = [8, 32], strides = [1, 1]} : vector<8x128xf32> to vector<8x32xf32>
    %193 = vector.extract_strided_slice %188 {offsets = [0, 96], sizes = [8, 32], strides = [1, 1]} : vector<8x128xf32> to vector<8x32xf32>
    %194 = arith.mulf %191, %172 : vector<8x32xf32>
    %195 = arith.mulf %190, %192 : vector<8x32xf32>
    %196 = arith.addf %194, %195 : vector<8x32xf32>
    %197 = math.tanh %196 : vector<8x32xf32>
    %198 = arith.mulf %193, %197 : vector<8x32xf32>
    %199 = arith.index_cast %178 : i32 to index
    %c0_63 = arith.constant 0 : index
    %200 = vector.load %arg11[%199, %c0_63] : memref<64x32xf32, #tpu.memory_space<vmem>>, vector<8x32xf32>
    tpu.vector_store %arg11[%199, %c0_63], %198 {strides = array<i32>} : memref<64x32xf32, #tpu.memory_space<vmem>>, vector<8x32xf32>,
    %c8_i32_64 = arith.constant 8 : i32
    %c0_65 = arith.constant 0 : index
    %c0_66 = arith.constant 0 : index
    %201 = vector.load %arg11[%c0_65, %c0_66] : memref<64x32xf32, #tpu.memory_space<vmem>>, vector<64x32xf32>
    %c0_67 = arith.constant 0 : index
    %c0_68 = arith.constant 0 : index
    %202 = vector.load %arg5[%c0_67, %c0_68] : memref<32x128xf32, #tpu.memory_space<vmem>>, vector<32x128xf32>
    %cst_69 = arith.constant dense<0.000000e+00> : vector<64x128xf32>
    %203 = tpu.matmul %201, %202, %cst_69 {dimension_numbers = #tpu.dot_dimension_numbers<[1], [0], [0], [1], [0, 0, 1, 1], [], []>} : vector<64x32xf32>, vector<32x128xf32>, vector<64x128xf32> -> vector<64x128xf32>
    %c0_70 = arith.constant 0 : index
    %c0_71 = arith.constant 0 : index
    %204 = vector.load %arg7[%c0_70, %c0_71] : memref<1x128xf32, #tpu.memory_space<vmem>>, vector<1x128xf32>
    %205 = vector.broadcast %204 : vector<1x128xf32> to vector<64x128xf32>
    %206 = arith.addf %203, %205 : vector<64x128xf32>
    %c0_72 = arith.constant 0 : index
    %c0_73 = arith.constant 0 : index
    %207 = vector.load %arg12[%c0_72, %c0_73] : memref<64x128xf32, #tpu.memory_space<vmem>>, vector<64x128xf32>
    tpu.vector_store %arg12[%c0_72, %c0_73], %206 {strides = array<i32>} : memref<64x128xf32, #tpu.memory_space<vmem>>, vector<64x128xf32>,
    %cst_74 = arith.constant 0.000000e+00 : f32
    %208 = vector.broadcast %cst_74 : f32 to vector<8x32xf32>
    %c0_i32_75 = arith.constant 0 : i32
    %c8_i32_76 = arith.constant 8 : i32
    %209 = arith.muli %c0_i32_75, %c8_i32_76 : i32
    %210 = tpu.assume_multiple %209, 8 : i32
    %211 = arith.index_cast %210 : i32 to index
    %c0_77 = arith.constant 0 : index
    %212 = vector.load %arg12[%211, %c0_77] : memref<64x128xf32, #tpu.memory_space<vmem>>, vector<8x128xf32>
    %c0_78 = arith.constant 0 : index
    %c0_79 = arith.constant 0 : index
    %213 = vector.load %arg6[%c0_78, %c0_79] : memref<32x128xf32, #tpu.memory_space<vmem>>, vector<32x128xf32>
    %cst_80 = arith.constant dense<0.000000e+00> : vector<8x128xf32>
    %214 = tpu.matmul %208, %213, %cst_80 {dimension_numbers = #tpu.dot_dimension_numbers<[1], [0], [0], [1], [0, 0, 1, 1], [], []>} : vector<8x32xf32>, vector<32x128xf32>, vector<8x128xf32> -> vector<8x128xf32>
    %215 = arith.addf %212, %214 : vector<8x128xf32>
    %216 = arith.negf %215 : vector<8x128xf32>
    %217 = math.exp %216 : vector<8x128xf32>
    %cst_81 = arith.constant 1.000000e+00 : f32
    %218 = vector.broadcast %cst_81 : f32 to vector<8x128xf32>
    %219 = arith.addf %218, %217 : vector<8x128xf32>
    %220 = arith.divf %218, %219 : vector<8x128xf32>
    %221 = math.tanh %215 : vector<8x128xf32>
    %222 = vector.extract_strided_slice %220 {offsets = [0, 0], sizes = [8, 32], strides = [1, 1]} : vector<8x128xf32> to vector<8x32xf32>
    %223 = vector.extract_strided_slice %220 {offsets = [0, 32], sizes = [8, 32], strides = [1, 1]} : vector<8x128xf32> to vector<8x32xf32>
    %224 = vector.extract_strided_slice %221 {offsets = [0, 64], sizes = [8, 32], strides = [1, 1]} : vector<8x128xf32> to vector<8x32xf32>
    %225 = vector.extract_strided_slice %220 {offsets = [0, 96], sizes = [8, 32], strides = [1, 1]} : vector<8x128xf32> to vector<8x32xf32>
    %226 = arith.mulf %223, %208 : vector<8x32xf32>
    %227 = arith.mulf %222, %224 : vector<8x32xf32>
    %228 = arith.addf %226, %227 : vector<8x32xf32>
    %229 = math.tanh %228 : vector<8x32xf32>
    %230 = arith.mulf %225, %229 : vector<8x32xf32>
    %c1_i32_82 = arith.constant 1 : i32
    %c8_i32_83 = arith.constant 8 : i32
    %231 = arith.muli %c1_i32_82, %c8_i32_83 : i32
    %232 = tpu.assume_multiple %231, 8 : i32
    %233 = arith.index_cast %232 : i32 to index
    %c0_84 = arith.constant 0 : index
    %234 = vector.load %arg12[%233, %c0_84] : memref<64x128xf32, #tpu.memory_space<vmem>>, vector<8x128xf32>
    %c0_85 = arith.constant 0 : index
    %c0_86 = arith.constant 0 : index
    %235 = vector.load %arg6[%c0_85, %c0_86] : memref<32x128xf32, #tpu.memory_space<vmem>>, vector<32x128xf32>
    %cst_87 = arith.constant dense<0.000000e+00> : vector<8x128xf32>
    %236 = tpu.matmul %230, %235, %cst_87 {dimension_numbers = #tpu.dot_dimension_numbers<[1], [0], [0], [1], [0, 0, 1, 1], [], []>} : vector<8x32xf32>, vector<32x128xf32>, vector<8x128xf32> -> vector<8x128xf32>
    %237 = arith.addf %234, %236 : vector<8x128xf32>
    %238 = arith.negf %237 : vector<8x128xf32>
    %239 = math.exp %238 : vector<8x128xf32>
    %cst_88 = arith.constant 1.000000e+00 : f32
    %240 = vector.broadcast %cst_88 : f32 to vector<8x128xf32>
    %241 = arith.addf %240, %239 : vector<8x128xf32>
    %242 = arith.divf %240, %241 : vector<8x128xf32>
    %243 = math.tanh %237 : vector<8x128xf32>
    %244 = vector.extract_strided_slice %242 {offsets = [0, 0], sizes = [8, 32], strides = [1, 1]} : vector<8x128xf32> to vector<8x32xf32>
    %245 = vector.extract_strided_slice %242 {offsets = [0, 32], sizes = [8, 32], strides = [1, 1]} : vector<8x128xf32> to vector<8x32xf32>
    %246 = vector.extract_strided_slice %243 {offsets = [0, 64], sizes = [8, 32], strides = [1, 1]} : vector<8x128xf32> to vector<8x32xf32>
    %247 = vector.extract_strided_slice %242 {offsets = [0, 96], sizes = [8, 32], strides = [1, 1]} : vector<8x128xf32> to vector<8x32xf32>
    %248 = arith.mulf %245, %228 : vector<8x32xf32>
    %249 = arith.mulf %244, %246 : vector<8x32xf32>
    %250 = arith.addf %248, %249 : vector<8x32xf32>
    %251 = math.tanh %250 : vector<8x32xf32>
    %252 = arith.mulf %247, %251 : vector<8x32xf32>
    %c2_i32_89 = arith.constant 2 : i32
    %c8_i32_90 = arith.constant 8 : i32
    %253 = arith.muli %c2_i32_89, %c8_i32_90 : i32
    %254 = tpu.assume_multiple %253, 8 : i32
    %255 = arith.index_cast %254 : i32 to index
    %c0_91 = arith.constant 0 : index
    %256 = vector.load %arg12[%255, %c0_91] : memref<64x128xf32, #tpu.memory_space<vmem>>, vector<8x128xf32>
    %c0_92 = arith.constant 0 : index
    %c0_93 = arith.constant 0 : index
    %257 = vector.load %arg6[%c0_92, %c0_93] : memref<32x128xf32, #tpu.memory_space<vmem>>, vector<32x128xf32>
    %cst_94 = arith.constant dense<0.000000e+00> : vector<8x128xf32>
    %258 = tpu.matmul %252, %257, %cst_94 {dimension_numbers = #tpu.dot_dimension_numbers<[1], [0], [0], [1], [0, 0, 1, 1], [], []>} : vector<8x32xf32>, vector<32x128xf32>, vector<8x128xf32> -> vector<8x128xf32>
    %259 = arith.addf %256, %258 : vector<8x128xf32>
    %260 = arith.negf %259 : vector<8x128xf32>
    %261 = math.exp %260 : vector<8x128xf32>
    %cst_95 = arith.constant 1.000000e+00 : f32
    %262 = vector.broadcast %cst_95 : f32 to vector<8x128xf32>
    %263 = arith.addf %262, %261 : vector<8x128xf32>
    %264 = arith.divf %262, %263 : vector<8x128xf32>
    %265 = math.tanh %259 : vector<8x128xf32>
    %266 = vector.extract_strided_slice %264 {offsets = [0, 0], sizes = [8, 32], strides = [1, 1]} : vector<8x128xf32> to vector<8x32xf32>
    %267 = vector.extract_strided_slice %264 {offsets = [0, 32], sizes = [8, 32], strides = [1, 1]} : vector<8x128xf32> to vector<8x32xf32>
    %268 = vector.extract_strided_slice %265 {offsets = [0, 64], sizes = [8, 32], strides = [1, 1]} : vector<8x128xf32> to vector<8x32xf32>
    %269 = vector.extract_strided_slice %264 {offsets = [0, 96], sizes = [8, 32], strides = [1, 1]} : vector<8x128xf32> to vector<8x32xf32>
    %270 = arith.mulf %267, %250 : vector<8x32xf32>
    %271 = arith.mulf %266, %268 : vector<8x32xf32>
    %272 = arith.addf %270, %271 : vector<8x32xf32>
    %273 = math.tanh %272 : vector<8x32xf32>
    %274 = arith.mulf %269, %273 : vector<8x32xf32>
    %c3_i32_96 = arith.constant 3 : i32
    %c8_i32_97 = arith.constant 8 : i32
    %275 = arith.muli %c3_i32_96, %c8_i32_97 : i32
    %276 = tpu.assume_multiple %275, 8 : i32
    %277 = arith.index_cast %276 : i32 to index
    %c0_98 = arith.constant 0 : index
    %278 = vector.load %arg12[%277, %c0_98] : memref<64x128xf32, #tpu.memory_space<vmem>>, vector<8x128xf32>
    %c0_99 = arith.constant 0 : index
    %c0_100 = arith.constant 0 : index
    %279 = vector.load %arg6[%c0_99, %c0_100] : memref<32x128xf32, #tpu.memory_space<vmem>>, vector<32x128xf32>
    %cst_101 = arith.constant dense<0.000000e+00> : vector<8x128xf32>
    %280 = tpu.matmul %274, %279, %cst_101 {dimension_numbers = #tpu.dot_dimension_numbers<[1], [0], [0], [1], [0, 0, 1, 1], [], []>} : vector<8x32xf32>, vector<32x128xf32>, vector<8x128xf32> -> vector<8x128xf32>
    %281 = arith.addf %278, %280 : vector<8x128xf32>
    %282 = arith.negf %281 : vector<8x128xf32>
    %283 = math.exp %282 : vector<8x128xf32>
    %cst_102 = arith.constant 1.000000e+00 : f32
    %284 = vector.broadcast %cst_102 : f32 to vector<8x128xf32>
    %285 = arith.addf %284, %283 : vector<8x128xf32>
    %286 = arith.divf %284, %285 : vector<8x128xf32>
    %287 = math.tanh %281 : vector<8x128xf32>
    %288 = vector.extract_strided_slice %286 {offsets = [0, 0], sizes = [8, 32], strides = [1, 1]} : vector<8x128xf32> to vector<8x32xf32>
    %289 = vector.extract_strided_slice %286 {offsets = [0, 32], sizes = [8, 32], strides = [1, 1]} : vector<8x128xf32> to vector<8x32xf32>
    %290 = vector.extract_strided_slice %287 {offsets = [0, 64], sizes = [8, 32], strides = [1, 1]} : vector<8x128xf32> to vector<8x32xf32>
    %291 = vector.extract_strided_slice %286 {offsets = [0, 96], sizes = [8, 32], strides = [1, 1]} : vector<8x128xf32> to vector<8x32xf32>
    %292 = arith.mulf %289, %272 : vector<8x32xf32>
    %293 = arith.mulf %288, %290 : vector<8x32xf32>
    %294 = arith.addf %292, %293 : vector<8x32xf32>
    %295 = math.tanh %294 : vector<8x32xf32>
    %296 = arith.mulf %291, %295 : vector<8x32xf32>
    %c4_i32_103 = arith.constant 4 : i32
    %c8_i32_104 = arith.constant 8 : i32
    %297 = arith.muli %c4_i32_103, %c8_i32_104 : i32
    %298 = tpu.assume_multiple %297, 8 : i32
    %299 = arith.index_cast %298 : i32 to index
    %c0_105 = arith.constant 0 : index
    %300 = vector.load %arg12[%299, %c0_105] : memref<64x128xf32, #tpu.memory_space<vmem>>, vector<8x128xf32>
    %c0_106 = arith.constant 0 : index
    %c0_107 = arith.constant 0 : index
    %301 = vector.load %arg6[%c0_106, %c0_107] : memref<32x128xf32, #tpu.memory_space<vmem>>, vector<32x128xf32>
    %cst_108 = arith.constant dense<0.000000e+00> : vector<8x128xf32>
    %302 = tpu.matmul %296, %301, %cst_108 {dimension_numbers = #tpu.dot_dimension_numbers<[1], [0], [0], [1], [0, 0, 1, 1], [], []>} : vector<8x32xf32>, vector<32x128xf32>, vector<8x128xf32> -> vector<8x128xf32>
    %303 = arith.addf %300, %302 : vector<8x128xf32>
    %304 = arith.negf %303 : vector<8x128xf32>
    %305 = math.exp %304 : vector<8x128xf32>
    %cst_109 = arith.constant 1.000000e+00 : f32
    %306 = vector.broadcast %cst_109 : f32 to vector<8x128xf32>
    %307 = arith.addf %306, %305 : vector<8x128xf32>
    %308 = arith.divf %306, %307 : vector<8x128xf32>
    %309 = math.tanh %303 : vector<8x128xf32>
    %310 = vector.extract_strided_slice %308 {offsets = [0, 0], sizes = [8, 32], strides = [1, 1]} : vector<8x128xf32> to vector<8x32xf32>
    %311 = vector.extract_strided_slice %308 {offsets = [0, 32], sizes = [8, 32], strides = [1, 1]} : vector<8x128xf32> to vector<8x32xf32>
    %312 = vector.extract_strided_slice %309 {offsets = [0, 64], sizes = [8, 32], strides = [1, 1]} : vector<8x128xf32> to vector<8x32xf32>
    %313 = vector.extract_strided_slice %308 {offsets = [0, 96], sizes = [8, 32], strides = [1, 1]} : vector<8x128xf32> to vector<8x32xf32>
    %314 = arith.mulf %311, %294 : vector<8x32xf32>
    %315 = arith.mulf %310, %312 : vector<8x32xf32>
    %316 = arith.addf %314, %315 : vector<8x32xf32>
    %317 = math.tanh %316 : vector<8x32xf32>
    %318 = arith.mulf %313, %317 : vector<8x32xf32>
    %c5_i32_110 = arith.constant 5 : i32
    %c8_i32_111 = arith.constant 8 : i32
    %319 = arith.muli %c5_i32_110, %c8_i32_111 : i32
    %320 = tpu.assume_multiple %319, 8 : i32
    %321 = arith.index_cast %320 : i32 to index
    %c0_112 = arith.constant 0 : index
    %322 = vector.load %arg12[%321, %c0_112] : memref<64x128xf32, #tpu.memory_space<vmem>>, vector<8x128xf32>
    %c0_113 = arith.constant 0 : index
    %c0_114 = arith.constant 0 : index
    %323 = vector.load %arg6[%c0_113, %c0_114] : memref<32x128xf32, #tpu.memory_space<vmem>>, vector<32x128xf32>
    %cst_115 = arith.constant dense<0.000000e+00> : vector<8x128xf32>
    %324 = tpu.matmul %318, %323, %cst_115 {dimension_numbers = #tpu.dot_dimension_numbers<[1], [0], [0], [1], [0, 0, 1, 1], [], []>} : vector<8x32xf32>, vector<32x128xf32>, vector<8x128xf32> -> vector<8x128xf32>
    %325 = arith.addf %322, %324 : vector<8x128xf32>
    %326 = arith.negf %325 : vector<8x128xf32>
    %327 = math.exp %326 : vector<8x128xf32>
    %cst_116 = arith.constant 1.000000e+00 : f32
    %328 = vector.broadcast %cst_116 : f32 to vector<8x128xf32>
    %329 = arith.addf %328, %327 : vector<8x128xf32>
    %330 = arith.divf %328, %329 : vector<8x128xf32>
    %331 = math.tanh %325 : vector<8x128xf32>
    %332 = vector.extract_strided_slice %330 {offsets = [0, 0], sizes = [8, 32], strides = [1, 1]} : vector<8x128xf32> to vector<8x32xf32>
    %333 = vector.extract_strided_slice %330 {offsets = [0, 32], sizes = [8, 32], strides = [1, 1]} : vector<8x128xf32> to vector<8x32xf32>
    %334 = vector.extract_strided_slice %331 {offsets = [0, 64], sizes = [8, 32], strides = [1, 1]} : vector<8x128xf32> to vector<8x32xf32>
    %335 = vector.extract_strided_slice %330 {offsets = [0, 96], sizes = [8, 32], strides = [1, 1]} : vector<8x128xf32> to vector<8x32xf32>
    %336 = arith.mulf %333, %316 : vector<8x32xf32>
    %337 = arith.mulf %332, %334 : vector<8x32xf32>
    %338 = arith.addf %336, %337 : vector<8x32xf32>
    %339 = math.tanh %338 : vector<8x32xf32>
    %340 = arith.mulf %335, %339 : vector<8x32xf32>
    %c6_i32_117 = arith.constant 6 : i32
    %c8_i32_118 = arith.constant 8 : i32
    %341 = arith.muli %c6_i32_117, %c8_i32_118 : i32
    %342 = tpu.assume_multiple %341, 8 : i32
    %343 = arith.index_cast %342 : i32 to index
    %c0_119 = arith.constant 0 : index
    %344 = vector.load %arg12[%343, %c0_119] : memref<64x128xf32, #tpu.memory_space<vmem>>, vector<8x128xf32>
    %c0_120 = arith.constant 0 : index
    %c0_121 = arith.constant 0 : index
    %345 = vector.load %arg6[%c0_120, %c0_121] : memref<32x128xf32, #tpu.memory_space<vmem>>, vector<32x128xf32>
    %cst_122 = arith.constant dense<0.000000e+00> : vector<8x128xf32>
    %346 = tpu.matmul %340, %345, %cst_122 {dimension_numbers = #tpu.dot_dimension_numbers<[1], [0], [0], [1], [0, 0, 1, 1], [], []>} : vector<8x32xf32>, vector<32x128xf32>, vector<8x128xf32> -> vector<8x128xf32>
    %347 = arith.addf %344, %346 : vector<8x128xf32>
    %348 = arith.negf %347 : vector<8x128xf32>
    %349 = math.exp %348 : vector<8x128xf32>
    %cst_123 = arith.constant 1.000000e+00 : f32
    %350 = vector.broadcast %cst_123 : f32 to vector<8x128xf32>
    %351 = arith.addf %350, %349 : vector<8x128xf32>
    %352 = arith.divf %350, %351 : vector<8x128xf32>
    %353 = math.tanh %347 : vector<8x128xf32>
    %354 = vector.extract_strided_slice %352 {offsets = [0, 0], sizes = [8, 32], strides = [1, 1]} : vector<8x128xf32> to vector<8x32xf32>
    %355 = vector.extract_strided_slice %352 {offsets = [0, 32], sizes = [8, 32], strides = [1, 1]} : vector<8x128xf32> to vector<8x32xf32>
    %356 = vector.extract_strided_slice %353 {offsets = [0, 64], sizes = [8, 32], strides = [1, 1]} : vector<8x128xf32> to vector<8x32xf32>
    %357 = vector.extract_strided_slice %352 {offsets = [0, 96], sizes = [8, 32], strides = [1, 1]} : vector<8x128xf32> to vector<8x32xf32>
    %358 = arith.mulf %355, %338 : vector<8x32xf32>
    %359 = arith.mulf %354, %356 : vector<8x32xf32>
    %360 = arith.addf %358, %359 : vector<8x32xf32>
    %361 = math.tanh %360 : vector<8x32xf32>
    %362 = arith.mulf %357, %361 : vector<8x32xf32>
    %c7_i32_124 = arith.constant 7 : i32
    %c8_i32_125 = arith.constant 8 : i32
    %363 = arith.muli %c7_i32_124, %c8_i32_125 : i32
    %364 = tpu.assume_multiple %363, 8 : i32
    %365 = arith.index_cast %364 : i32 to index
    %c0_126 = arith.constant 0 : index
    %366 = vector.load %arg12[%365, %c0_126] : memref<64x128xf32, #tpu.memory_space<vmem>>, vector<8x128xf32>
    %c0_127 = arith.constant 0 : index
    %c0_128 = arith.constant 0 : index
    %367 = vector.load %arg6[%c0_127, %c0_128] : memref<32x128xf32, #tpu.memory_space<vmem>>, vector<32x128xf32>
    %cst_129 = arith.constant dense<0.000000e+00> : vector<8x128xf32>
    %368 = tpu.matmul %362, %367, %cst_129 {dimension_numbers = #tpu.dot_dimension_numbers<[1], [0], [0], [1], [0, 0, 1, 1], [], []>} : vector<8x32xf32>, vector<32x128xf32>, vector<8x128xf32> -> vector<8x128xf32>
    %369 = arith.addf %366, %368 : vector<8x128xf32>
    %370 = arith.negf %369 : vector<8x128xf32>
    %371 = math.exp %370 : vector<8x128xf32>
    %cst_130 = arith.constant 1.000000e+00 : f32
    %372 = vector.broadcast %cst_130 : f32 to vector<8x128xf32>
    %373 = arith.addf %372, %371 : vector<8x128xf32>
    %374 = arith.divf %372, %373 : vector<8x128xf32>
    %375 = math.tanh %369 : vector<8x128xf32>
    %376 = vector.extract_strided_slice %374 {offsets = [0, 0], sizes = [8, 32], strides = [1, 1]} : vector<8x128xf32> to vector<8x32xf32>
    %377 = vector.extract_strided_slice %374 {offsets = [0, 32], sizes = [8, 32], strides = [1, 1]} : vector<8x128xf32> to vector<8x32xf32>
    %378 = vector.extract_strided_slice %375 {offsets = [0, 64], sizes = [8, 32], strides = [1, 1]} : vector<8x128xf32> to vector<8x32xf32>
    %379 = vector.extract_strided_slice %374 {offsets = [0, 96], sizes = [8, 32], strides = [1, 1]} : vector<8x128xf32> to vector<8x32xf32>
    %380 = arith.mulf %377, %360 : vector<8x32xf32>
    %381 = arith.mulf %376, %378 : vector<8x32xf32>
    %382 = arith.addf %380, %381 : vector<8x32xf32>
    %383 = math.tanh %382 : vector<8x32xf32>
    %384 = arith.mulf %379, %383 : vector<8x32xf32>
    %c8_i32_131 = arith.constant 8 : i32
    %c0_132 = arith.constant 0 : index
    %c0_133 = arith.constant 0 : index
    %385 = vector.load %arg8[%c0_132, %c0_133] : memref<32x128xf32, #tpu.memory_space<vmem>>, vector<32x128xf32>
    %cst_134 = arith.constant dense<0.000000e+00> : vector<8x128xf32>
    %386 = tpu.matmul %384, %385, %cst_134 {dimension_numbers = #tpu.dot_dimension_numbers<[1], [0], [0], [1], [0, 0, 1, 1], [], []>} : vector<8x32xf32>, vector<32x128xf32>, vector<8x128xf32> -> vector<8x128xf32>
    %c0_135 = arith.constant 0 : index
    %c0_136 = arith.constant 0 : index
    %387 = vector.load %arg9[%c0_135, %c0_136] : memref<1x128xf32, #tpu.memory_space<vmem>>, vector<1x128xf32>
    %388 = vector.broadcast %387 : vector<1x128xf32> to vector<8x128xf32>
    %389 = arith.addf %386, %388 : vector<8x128xf32>
    %c0_137 = arith.constant 0 : index
    %c0_138 = arith.constant 0 : index
    %390 = vector.load %arg10[%c0_137, %c0_138] : memref<8x128xf32, #tpu.memory_space<vmem>>, vector<8x128xf32>
    tpu.vector_store %arg10[%c0_137, %c0_138], %389 {strides = array<i32>} : memref<8x128xf32, #tpu.memory_space<vmem>>, vector<8x128xf32>,
    return
  }
  func.func @transform_0(%arg0: i32) -> (i32, i32, i32) {
    %c0_i32 = arith.constant 0 : i32
    %c0_i32_0 = arith.constant 0 : i32
    %c0_i32_1 = arith.constant 0 : i32
    return %arg0, %c0_i32, %c0_i32_0 : i32, i32, i32
  }
  func.func @transform_1(%arg0: i32) -> (i32, i32) {
    %c0_i32 = arith.constant 0 : i32
    %c0_i32_0 = arith.constant 0 : i32
    %c0_i32_1 = arith.constant 0 : i32
    return %c0_i32, %c0_i32_0 : i32, i32
  }
  func.func @transform_2(%arg0: i32) -> (i32, i32) {
    %c0_i32 = arith.constant 0 : i32
    %c0_i32_0 = arith.constant 0 : i32
    %c0_i32_1 = arith.constant 0 : i32
    return %c0_i32, %c0_i32_0 : i32, i32
  }
  func.func @transform_3(%arg0: i32) -> (i32, i32) {
    %c0_i32 = arith.constant 0 : i32
    %c0_i32_0 = arith.constant 0 : i32
    %c0_i32_1 = arith.constant 0 : i32
    return %c0_i32, %c0_i32_0 : i32, i32
  }
  func.func @transform_4(%arg0: i32) -> (i32, i32) {
    %c0_i32 = arith.constant 0 : i32
    %c0_i32_0 = arith.constant 0 : i32
    %c0_i32_1 = arith.constant 0 : i32
    return %c0_i32, %c0_i32_0 : i32, i32
  }
  func.func @transform_5(%arg0: i32) -> (i32, i32) {
    %c0_i32 = arith.constant 0 : i32
    %c0_i32_0 = arith.constant 0 : i32
    %c0_i32_1 = arith.constant 0 : i32
    return %c0_i32, %c0_i32_0 : i32, i32
  }
  func.func @transform_6(%arg0: i32) -> (i32, i32) {
    %c0_i32 = arith.constant 0 : i32
    %c0_i32_0 = arith.constant 0 : i32
    %c0_i32_1 = arith.constant 0 : i32
    return %c0_i32, %c0_i32_0 : i32, i32
  }
  func.func @transform_7(%arg0: i32) -> (i32, i32) {
    %c0_i32 = arith.constant 0 : i32
    %c0_i32_0 = arith.constant 0 : i32
    %c0_i32_1 = arith.constant 0 : i32
    return %c0_i32, %c0_i32_0 : i32, i32
  }
  func.func @transform_8(%arg0: i32) -> (i32, i32) {
    %c0_i32 = arith.constant 0 : i32
    %c0_i32_0 = arith.constant 0 : i32
    %c0_i32_1 = arith.constant 0 : i32
    return %c0_i32, %c0_i32_0 : i32, i32
  }
  func.func @transform_9(%arg0: i32) -> (i32, i32) {
    %c0_i32 = arith.constant 0 : i32
    %c0_i32_0 = arith.constant 0 : i32
    return %arg0, %c0_i32 : i32, i32
  }
}

</mosaic_0001>

<bundles_post_ra>
// kernel: lstm_forward.1
= control target key start
LH: loop header
LB: loop body
LE: loop exit
PB: predicated region body
PF: predicated region fallthrough
CT: control target
= control target key end

     0   :  { %vm73_vm0 = vcmask 1043456   ;;  %vm48_vm1 = vcmask 31744   ;;  %v2737_v0 = vmov 0.0|0.0   ;;  %vm2738_vm2 = vmmov 0   ;;  %s2740_s23 = smov 64   ;;  %s3151_s2 = inlined_call_operand.vmem [shape: f32[32,128], index: 2, kind: input, shape index: {}]   ;;  %s3152_s1 = inlined_call_operand.vmem [shape: f32[4,128], index: 1, kind: input, shape index: {}]   ;;  %s3153_s0 = inlined_call_operand.vmem [shape: f32[1,64,4], index: 0, kind: input, shape index: {}]   ;;  %s3154_s3 = inlined_call_operand.vmem [shape: f32[1,128], index: 3, kind: input, shape index: {}]   ;;  %s3155_s4 = inlined_call_operand.vmem [shape: f32[32,128], index: 4, kind: input, shape index: {}]   ;;  %s3156_s5 = inlined_call_operand.vmem [shape: f32[32,128], index: 5, kind: input, shape index: {}]   ;;  %s3157_s6 = inlined_call_operand.vmem [shape: f32[1,128], index: 6, kind: input, shape index: {}]   ;;  %s3158_s7 = inlined_call_operand.vmem [shape: f32[32,128], index: 7, kind: input, shape index: {}]   ;;  %s3159_s8 = inlined_call_operand.vmem [shape: f32[1,128], index: 8, kind: input, shape index: {}]   ;;  %s3160_s9 = inlined_call_operand.vmem [shape: f32[8,128], index: 9, kind: output, shape index: {}]  }
   0x1   :  { %2494 = vmatprep.subr.bf16.mxu1 %v2737_v0  ;;  %v191_v1 = vld [vmem:[%s3151_s2] sm:$0xff]  ;;  %v192_v2 = vld [vmem:[%s3151_s2 + $0x8] sm:$0xff]  ;;  %v193_v7 = vld [vmem:[%s3151_s2 + $0x10] sm:$0xff]  ;;  %v2739_v8 = vmov 0.0   ;;  %vm195_vm3 = vcmask 261120  }
   0x2   :  { %v40_v3 = vld [vmem:[%s3152_s1] sm:$0xf]  ;;  %v2802_v4 = vpack.c.bf16 %v192_v2, %v191_v1  ;;  %v33_v6 = vld [vmem:[%s3153_s0 + $0x8] sm:$0xff]  ;;  %2295 = vmatprep.mubr.msk.f32.mxu1 %vm2738_vm2, %v2739_v8  ;;  %v194_v9 = vld [vmem:[%s3151_s2 + $0x18] sm:$0xff] }
   0x3   :  { %2273 = vmatprep.subr.msk.mxu0 %vm73_vm0, %v40_v3  ;;  %v32_v5 = vld [vmem:[%s3153_s0] sm:$0xff]  ;;  %v2823_v10 = vpack.c.bf16 %v194_v9, %v193_v7  ;;  %v34_v46 = vld [vmem:[%s3153_s0 + $0x10] sm:$0xff]  ;;  %v35_v47 = vld [vmem:[%s3153_s0 + $0x18] sm:$0xff] }
   0x4   :  { %2274 = vmatpush3.msk.msra.mxu0 %vm73_vm0, %v40_v3  ;;  %2275 = vmatprep.mubr.msk.f32.mxu0 %vm48_vm1, %v32_v5  ;;  %v2843_v12 = vld [vmem:[%s3154_s3] ss:$0 sm:$0xff]  ;;  %s2741_s3 = smov 32   ;;  %v37_v49 = vld [vmem:[%s3153_s0 + $0x28] sm:$0xff]  ;;  %v38_v50 = vld [vmem:[%s3153_s0 + $0x30] sm:$0xff] }
   0x5   :  { %2496 = vmatpush3.bf16.msra.mxu1 %v2802_v4  ;;  %2276 = vmatmul.mubr.msk.f32.vlgmr.msra.gmra.mrb[0].mxu0 %vm48_vm1, %v33_v6  ;;  %v36_v48 = vld [vmem:[%s3153_s0 + $0x20] sm:$0xff]  ;;  %v39_v51 = vld [vmem:[%s3153_s0 + $0x38] sm:$0xff] }
   0x6   :  { %2497 = vmatprep.subr.bf16.mxu1 %v2737_v0  ;;  %2506 = vmatprep.subr.bf16.mxu0 %v2737_v0 }
   0x7   :  { %2508 = vmatpush3.bf16.msra.mxu0 %v2802_v4  ;;  %2278 = vmatprep.mubr.msk.f32.mxu0 %vm48_vm1, %v34_v46 }
   0x8   :  { %2509 = vmatprep.subr.bf16.mxu0 %v2737_v0 }
   0x9   :  { %2499 = vmatpush3.bf16.msra.mxu1 %v2823_v10  ;;  %2279 = vmatmul.mubr.msk.f32.gmra.mrb[2].mxu0 %vm48_vm1, %v35_v47 }
   0xa   :  { %2500 = vmatprep.subr.bf16.mxu1 %v2737_v0  ;;  %2281 = vmatprep.mubr.msk.f32.mxu0 %vm48_vm1, %v36_v48 }
   0xb   :  { %2511 = vmatpush3.bf16.msra.mxu0 %v2823_v10 }
   0xc   :  { %2296 = vmatmul.mubr.f32.vlgmr.msra.gmra.mrb[0].mxu1 %v2739_v8  ;;  %2518 = vmatprep.subr.bf16.mxu0 %v2737_v0 }
   0xd   :  { %2502 = vmatpush3.bf16.msra.mxu1 %v2802_v4  ;;  %2306 = vmatprep.mubr.msk.f32.mxu1 %vm2738_vm2, %v2739_v8 }
   0xe   :  { %2503 = vmatprep.subr.bf16.mxu1 %v2737_v0  ;;  %2282 = vmatmul.mubr.msk.f32.gmra.mrb[4].mxu0 %vm48_vm1, %v37_v49 }
   0xf   :  { %2284 = vmatprep.mubr.msk.f32.mxu0 %vm48_vm1, %v38_v50 }
  0x11   :  { %2505 = vmatpush3.bf16.msra.mxu1 %v2823_v10 }
  0x12   :  { %2512 = vmatprep.subr.bf16.mxu1 %v2737_v0  ;;  %2285 = vmatmul.mubr.msk.f32.gmra.mrb[6].mxu0 %vm48_vm1, %v39_v51 }
  0x13   :  { %2317 = vmatprep.mubr.msk.f32.mxu0 %vm2738_vm2, %v2739_v8 }
  0xd8   :  { %v2277_v11 = vpop.f32.mrb[0].mxu0 }
  0xd9   :  { %v143_v13 = vpop.f32.mrb[1].mxu0  ;;  %v149_v32 = vadd.f32 %v2277_v11, %v2843_v12 }
  0xda   :  { %v144_v14 = vadd.f32 %v2843_v12, %v143_v13 }
  0xdc   :  { %v2280_v55 = vpop.f32.mrb[2].mxu0 }
  0xdd   :  { %v153_v56 = vpop.f32.mrb[3].mxu0 }
  0xde   :  { %v154_v62 = vadd.f32 %v2843_v12, %v153_v56 }
  0xdf   :  { %v265_v15 = vpop.f32.mrb[0].mxu1 }
  0xe0   :  { %v269_v16 = vadd.f32 %v265_v15, %v144_v14  ;;  %v2297_v17 = vpop.f32.mrb[1].mxu1 }
  0xe1   :  { %v2889_v57 = vpop.f32.mrb[4].mxu0 }
  0xe2   :  { %2609 = vtanh.f32 %v269_v16  ;;  %v2126_v19 = vmul.f32 -1.442695, %v269_v16  ;;  %v2891_v58 = vpop.f32.mrb[5].mxu0 }
  0xe4   :  { %2611 = vpow2.f32 %v2126_v19 }
  0xe5   :  { %v2893_v59 = vpop.f32.mrb[6].mxu0 }
  0xe6   :  { %v2895_v60 = vpop.f32.mrb[7].mxu0 }
  0xec   :  { %v2610_v18 = vpop.eup %2609 }
  0xed   :  { %279 = vrot.lane.b32.xlu0 %v2610_v18, %s2740_s23 }
  0xee   :  { %v2612_v20 = vpop.eup %2611 }
  0xef   :  { %v273_v21 = vadd.f32 1.0, %v2612_v20 }
  0xf1   :  { %2613 = vrcp.f32 %v273_v21  ;;  %v159_v21 = vadd.f32 %v2280_v55, %v2843_v12 }
  0xfb   :  { %v2614_v22 = vpop.eup %2613 }
  0xfc   :  { %v277_v25 = vmul.f32 0.0, %v2614_v22 }
 0x15f   :  { %v280_v23 = vpop.permute.xlu0 %279 }
 0x160   :  { %v282_v24 = vmul.f32 %v2614_v22, %v280_v23 }
 0x162   :  { %284 = vrot.lane.b32.xlu0 %v282_v24, %s2741_s3 }
 0x1d4   :  { %v285_v26 = vpop.permute.xlu0 %284 }
 0x1d5   :  { %v287_v27 = vadd.f32 %v285_v26, %v277_v25 }
 0x1d7   :  { %2615 = vtanh.f32 %v287_v27 }
 0x1e1   :  { %v2616_v28 = vpop.eup %2615 }
 0x1e2   :  { %290 = vrot.lane.b32.xlu1 %v2616_v28, %s2740_s23 }
 0x254   :  { %v291_v29 = vpop.permute.xlu1 %290 }
 0x255   :  { %v293_v30 = vmul.f32 %v2614_v22, %v291_v29 }
 0x257   :  { %295 = vrot.lane.b32.xlu1 %v293_v30, %s2741_s3 }
 0x2c9   :  { %v296_v31 = vpop.permute.xlu1 %295 }
 0x2ca   :  { %298 = vst.msk [vmem:[#allocation2] sm:$0xff] %vm195_vm3, %v296_v31  ;;  %2307 = vmatmul.mubr.msk.f32.vlgmr.msra.gmra.mrb[2].mxu1 %vm195_vm3, %v296_v31 }
 0x2cb   :  { %2514 = vmatpush3.bf16.msra.mxu1 %v2802_v4  ;;  %2328 = vmatprep.mubr.msk.f32.mxu1 %vm2738_vm2, %v2739_v8 }
 0x2cc   :  { %2515 = vmatprep.subr.bf16.mxu1 %v2737_v0 }
 0x2cf   :  { %2517 = vmatpush3.bf16.msra.mxu1 %v2823_v10 }
 0x2d0   :  { %2524 = vmatprep.subr.bf16.mxu1 %v2737_v0 }
 0x39d   :  { %v373_v33 = vpop.f32.mrb[2].mxu1 }
 0x39e   :  { %v377_v34 = vadd.f32 %v373_v33, %v149_v32  ;;  %v2308_v35 = vpop.f32.mrb[3].mxu1 }
 0x3a0   :  { %2617 = vtanh.f32 %v377_v34  ;;  %v2128_v37 = vmul.f32 -1.442695, %v377_v34 }
 0x3a2   :  { %2619 = vpow2.f32 %v2128_v37 }
 0x3aa   :  { %v2618_v36 = vpop.eup %2617 }
 0x3ab   :  { %387 = vrot.lane.b32.xlu0 %v2618_v36, %s2740_s23 }
 0x3ac   :  { %v2620_v38 = vpop.eup %2619 }
 0x3ad   :  { %v381_v39 = vadd.f32 1.0, %v2620_v38 }
 0x3af   :  { %2621 = vrcp.f32 %v381_v39  ;;  %v164_v39 = vadd.f32 %v2843_v12, %v2891_v58  ;;  %v169_v58 = vadd.f32 %v2889_v57, %v2843_v12 }
 0x3b9   :  { %v2622_v40 = vpop.eup %2621 }
 0x3ba   :  { %v385_v43 = vmul.f32 %v2622_v40, %v287_v27 }
 0x41d   :  { %v388_v41 = vpop.permute.xlu0 %387 }
 0x41e   :  { %v390_v42 = vmul.f32 %v2622_v40, %v388_v41 }
 0x420   :  { %392 = vrot.lane.b32.xlu1 %v390_v42, %s2741_s3 }
 0x492   :  { %v393_v44 = vpop.permute.xlu1 %392 }
 0x493   :  { %v395_v45 = vadd.f32 %v393_v44, %v385_v43 }
 0x495   :  { %2623 = vtanh.f32 %v395_v45 }
 0x49f   :  { %v2624_v52 = vpop.eup %2623 }
 0x4a0   :  { %398 = vrot.lane.b32.xlu0 %v2624_v52, %s2740_s23 }
 0x512   :  { %v399_v53 = vpop.permute.xlu0 %398 }
 0x513   :  { %v401_v54 = vmul.f32 %v2622_v40, %v399_v53 }
 0x515   :  { %403 = vrot.lane.b32.xlu1 %v401_v54, %s2741_s3 }
 0x587   :  { %v404_v61 = vpop.permute.xlu1 %403 }
 0x588   :  { %407 = vst.msk [vmem:[#allocation2 + $0x8] sm:$0xff] %vm195_vm3, %v404_v61  ;;  %2318 = vmatmul.mubr.msk.f32.vlgmr.msra.gmra.mrb[8].mxu0 %vm195_vm3, %v404_v61 }
 0x589   :  { %2520 = vmatpush3.bf16.msra.mxu0 %v2802_v4  ;;  %2339 = vmatprep.mubr.msk.f32.mxu0 %vm2738_vm2, %v2739_v8 }
 0x58a   :  { %2521 = vmatprep.subr.bf16.mxu0 %v2737_v0 }
 0x58d   :  { %2523 = vmatpush3.bf16.msra.mxu0 %v2823_v10 }
 0x58e   :  { %2530 = vmatprep.subr.bf16.mxu0 %v2737_v0 }
 0x65b   :  { %v482_v63 = vpop.f32.mrb[8].mxu0 }
 0x65c   :  { %v486_v1 = vadd.f32 %v482_v63, %v154_v62  ;;  %v2319_v2 = vpop.f32.mrb[9].mxu0 }
 0x65e   :  { %2625 = vtanh.f32 %v486_v1  ;;  %v2130_v5 = vmul.f32 -1.442695, %v486_v1 }
 0x660   :  { %2627 = vpow2.f32 %v2130_v5 }
 0x668   :  { %v2626_v3 = vpop.eup %2625 }
 0x669   :  { %496 = vrot.lane.b32.xlu0 %v2626_v3, %s2740_s23 }
 0x66a   :  { %v2628_v6 = vpop.eup %2627 }
 0x66b   :  { %v490_v7 = vadd.f32 1.0, %v2628_v6 }
 0x66d   :  { %2629 = vrcp.f32 %v490_v7 }
 0x677   :  { %v2630_v9 = vpop.eup %2629 }
 0x678   :  { %v494_v14 = vmul.f32 %v2630_v9, %v395_v45 }
 0x6db   :  { %v497_v11 = vpop.permute.xlu0 %496 }
 0x6dc   :  { %v499_v13 = vmul.f32 %v2630_v9, %v497_v11  ;;  %v1070_v11 = vld [vmem:[%s3155_s4] sm:$0xff] }
 0x6de   :  { %501 = vrot.lane.b32.xlu1 %v499_v13, %s2741_s3  ;;  %v1071_v13 = vld [vmem:[%s3155_s4 + $0x8] sm:$0xff] }
 0x750   :  { %v502_v15 = vpop.permute.xlu1 %501 }
 0x751   :  { %v504_v16 = vadd.f32 %v502_v15, %v494_v14  ;;  %v2542_v14 = vpack.c.bf16 %v1071_v13, %v1070_v11 }
 0x753   :  { %2631 = vtanh.f32 %v504_v16 }
 0x75d   :  { %v2632_v17 = vpop.eup %2631 }
 0x75e   :  { %507 = vrot.lane.b32.xlu0 %v2632_v17, %s2740_s23 }
 0x7d0   :  { %v508_v18 = vpop.permute.xlu0 %507 }
 0x7d1   :  { %v510_v19 = vmul.f32 %v2630_v9, %v508_v18  ;;  %v1072_v18 = vld [vmem:[%s3155_s4 + $0x10] sm:$0xff] }
 0x7d3   :  { %512 = vrot.lane.b32.xlu1 %v510_v19, %s2741_s3  ;;  %v1073_v19 = vld [vmem:[%s3155_s4 + $0x18] sm:$0xff] }
 0x845   :  { %v513_v20 = vpop.permute.xlu1 %512 }
 0x846   :  { %516 = vst.msk [vmem:[#allocation2 + $0x10] sm:$0xff] %vm195_vm3, %v513_v20  ;;  %2329 = vmatmul.mubr.msk.f32.vlgmr.msra.gmra.mrb[4].mxu1 %vm195_vm3, %v513_v20  ;;  %v2546_v20 = vpack.c.bf16 %v1073_v19, %v1072_v18 }
 0x847   :  { %2526 = vmatpush3.bf16.msra.mxu1 %v2802_v4  ;;  %2350 = vmatprep.mubr.msk.f32.mxu1 %vm2738_vm2, %v2739_v8 }
 0x848   :  { %2527 = vmatprep.subr.bf16.mxu1 %v2737_v0 }
 0x84b   :  { %2529 = vmatpush3.bf16.msra.mxu1 %v2823_v10 }
 0x84c   :  { %2536 = vmatprep.subr.bf16.mxu1 %v2737_v0 }
 0x919   :  { %v591_v22 = vpop.f32.mrb[4].mxu1 }
 0x91a   :  { %v595_v23 = vadd.f32 %v591_v22, %v159_v21  ;;  %v2330_v24 = vpop.f32.mrb[5].mxu1  ;;  %v1062_v22 = vld [vmem:[#allocation2] sm:$0xff] }
 0x91b   :  { %v1064_v24 = vld [vmem:[#allocation2 + $0x10] sm:$0xff] }
 0x91c   :  { %2633 = vtanh.f32 %v595_v23  ;;  %v2132_v26 = vmul.f32 -1.442695, %v595_v23  ;;  %v1063_v23 = vld [vmem:[#allocation2 + $0x8] sm:$0xff] }
 0x91e   :  { %2635 = vpow2.f32 %v2132_v26 }
 0x926   :  { %v2634_v25 = vpop.eup %2633 }
 0x927   :  { %605 = vrot.lane.b32.xlu0 %v2634_v25, %s2740_s23 }
 0x928   :  { %v2636_v27 = vpop.eup %2635 }
 0x929   :  { %v599_v28 = vadd.f32 1.0, %v2636_v27 }
 0x92b   :  { %2637 = vrcp.f32 %v599_v28  ;;  %v174_v28 = vadd.f32 %v2843_v12, %v2895_v60 }
 0x935   :  { %v2638_v29 = vpop.eup %2637 }
 0x936   :  { %v603_v32 = vmul.f32 %v2638_v29, %v504_v16 }
 0x999   :  { %v606_v30 = vpop.permute.xlu0 %605 }
 0x99a   :  { %v608_v31 = vmul.f32 %v2638_v29, %v606_v30 }
 0x99c   :  { %610 = vrot.lane.b32.xlu1 %v608_v31, %s2741_s3 }
 0xa0e   :  { %v611_v33 = vpop.permute.xlu1 %610 }
 0xa0f   :  { %v613_v34 = vadd.f32 %v611_v33, %v603_v32 }
 0xa11   :  { %2639 = vtanh.f32 %v613_v34 }
 0xa1b   :  { %v2640_v35 = vpop.eup %2639 }
 0xa1c   :  { %616 = vrot.lane.b32.xlu0 %v2640_v35, %s2740_s23 }
 0xa8e   :  { %v617_v36 = vpop.permute.xlu0 %616 }
 0xa8f   :  { %v619_v37 = vmul.f32 %v2638_v29, %v617_v36 }
 0xa91   :  { %621 = vrot.lane.b32.xlu1 %v619_v37, %s2741_s3 }
 0xb03   :  { %v622_v38 = vpop.permute.xlu1 %621 }
 0xb04   :  { %625 = vst.msk [vmem:[#allocation2 + $0x18] sm:$0xff] %vm195_vm3, %v622_v38  ;;  %2340 = vmatmul.mubr.msk.f32.vlgmr.msra.gmra.mrb[10].mxu0 %vm195_vm3, %v622_v38 }
 0xb05   :  { %2532 = vmatpush3.bf16.msra.mxu0 %v2802_v4  ;;  %2361 = vmatprep.mubr.msk.f32.mxu0 %vm2738_vm2, %v2739_v8 }
 0xb06   :  { %2533 = vmatprep.subr.bf16.mxu0 %v2737_v0 }
 0xb09   :  { %2535 = vmatpush3.bf16.msra.mxu0 %v2823_v10 }
 0xb0a   :  { %2543 = vmatprep.subr.bf16.mxu0 %v2542_v14 }
 0xb0b   :  { %v1065_v25 = vld [vmem:[#allocation2 + $0x18] sm:$0xff] }
 0xbd7   :  { %v700_v40 = vpop.f32.mrb[10].mxu0 }
 0xbd8   :  { %v704_v41 = vadd.f32 %v700_v40, %v164_v39  ;;  %v2341_v42 = vpop.f32.mrb[11].mxu0 }
 0xbda   :  { %2641 = vtanh.f32 %v704_v41  ;;  %v2134_v44 = vmul.f32 -1.442695, %v704_v41 }
 0xbdc   :  { %2643 = vpow2.f32 %v2134_v44 }
 0xbe4   :  { %v2642_v43 = vpop.eup %2641 }
 0xbe5   :  { %714 = vrot.lane.b32.xlu0 %v2642_v43, %s2740_s23 }
 0xbe6   :  { %v2644_v45 = vpop.eup %2643 }
 0xbe7   :  { %v708_v46 = vadd.f32 1.0, %v2644_v45 }
 0xbe9   :  { %2645 = vrcp.f32 %v708_v46 }
 0xbf3   :  { %v2646_v47 = vpop.eup %2645 }
 0xbf4   :  { %v712_v50 = vmul.f32 %v2646_v47, %v613_v34 }
 0xc57   :  { %v715_v48 = vpop.permute.xlu0 %714 }
 0xc58   :  { %v717_v49 = vmul.f32 %v2646_v47, %v715_v48  ;;  %v1219_v48 = vld [vmem:[%s3156_s5] sm:$0xff] }
 0xc5a   :  { %719 = vrot.lane.b32.xlu1 %v717_v49, %s2741_s3  ;;  %v1220_v49 = vld [vmem:[%s3156_s5 + $0x8] sm:$0xff] }
 0xccc   :  { %v720_v51 = vpop.permute.xlu1 %719 }
 0xccd   :  { %v722_v52 = vadd.f32 %v720_v51, %v712_v50  ;;  %v2995_v50 = vpack.c.bf16 %v1220_v49, %v1219_v48  ;;  %v1221_v51 = vld [vmem:[%s3156_s5 + $0x10] sm:$0xff] }
 0xccf   :  { %2647 = vtanh.f32 %v722_v52 }
 0xcd9   :  { %v2648_v53 = vpop.eup %2647 }
 0xcda   :  { %725 = vrot.lane.b32.xlu0 %v2648_v53, %s2740_s23 }
 0xd4c   :  { %v726_v54 = vpop.permute.xlu0 %725 }
 0xd4d   :  { %v728_v55 = vmul.f32 %v2646_v47, %v726_v54 }
 0xd4f   :  { %730 = vrot.lane.b32.xlu1 %v728_v55, %s2741_s3 }
 0xdc1   :  { %v731_v56 = vpop.permute.xlu1 %730 }
 0xdc2   :  { %734 = vst.msk [vmem:[#allocation2 + $0x20] sm:$0xff] %vm195_vm3, %v731_v56  ;;  %2351 = vmatmul.mubr.msk.f32.vlgmr.msra.gmra.mrb[6].mxu1 %vm195_vm3, %v731_v56 }
 0xdc3   :  { %2538 = vmatpush3.bf16.msra.mxu1 %v2802_v4  ;;  %2372 = vmatprep.mubr.msk.f32.mxu1 %vm2738_vm2, %v2739_v8 }
 0xdc4   :  { %2539 = vmatprep.subr.bf16.mxu1 %v2737_v0 }
 0xdc7   :  { %2541 = vmatpush3.bf16.msra.mxu1 %v2823_v10 }
 0xdc8   :  { %2550 = vmatprep.subr.bf16.mxu1 %v2737_v0 }
 0xdc9   :  { %v1066_v26 = vld [vmem:[#allocation2 + $0x20] sm:$0xff] }
 0xe95   :  { %v809_v61 = vpop.f32.mrb[6].mxu1 }
 0xe96   :  { %v813_v62 = vadd.f32 %v809_v61, %v169_v58  ;;  %v2352_v63 = vpop.f32.mrb[7].mxu1  ;;  %v179_v61 = vadd.f32 %v2893_v59, %v2843_v12 }
 0xe98   :  { %2649 = vtanh.f32 %v813_v62  ;;  %v2136_v4 = vmul.f32 -1.442695, %v813_v62 }
 0xe9a   :  { %2651 = vpow2.f32 %v2136_v4  ;;  %v3031_v4 = vld [vmem:[%s3157_s6] ss:$0 sm:$0xff] }
 0xea2   :  { %v2650_v1 = vpop.eup %2649 }
 0xea3   :  { %823 = vrot.lane.b32.xlu0 %v2650_v1, %s2740_s23 }
 0xea4   :  { %v2652_v2 = vpop.eup %2651 }
 0xea5   :  { %v817_v3 = vadd.f32 1.0, %v2652_v2 }
 0xea7   :  { %2653 = vrcp.f32 %v817_v3 }
 0xeb1   :  { %v2654_v5 = vpop.eup %2653 }
 0xeb2   :  { %v821_v7 = vmul.f32 %v2654_v5, %v722_v52  ;;  %v1222_v52 = vld [vmem:[%s3156_s5 + $0x18] sm:$0xff] }
 0xeb3   :  { %v3005_v53 = vpack.c.bf16 %v1222_v52, %v1221_v51 }
 0xf15   :  { %v824_v6 = vpop.permute.xlu0 %823 }
 0xf16   :  { %v826_v10 = vmul.f32 %v2654_v5, %v824_v6 }
 0xf18   :  { %828 = vrot.lane.b32.xlu1 %v826_v10, %s2741_s3 }
 0xf8a   :  { %v829_v9 = vpop.permute.xlu1 %828 }
 0xf8b   :  { %v831_v57 = vadd.f32 %v829_v9, %v821_v7 }
 0xf8d   :  { %2655 = vtanh.f32 %v831_v57 }
 0xf97   :  { %v2656_v15 = vpop.eup %2655 }
 0xf98   :  { %834 = vrot.lane.b32.xlu0 %v2656_v15, %s2740_s23 }
0x100a   :  { %v835_v16 = vpop.permute.xlu0 %834 }
0x100b   :  { %v837_v17 = vmul.f32 %v2654_v5, %v835_v16 }
0x100d   :  { %839 = vrot.lane.b32.xlu1 %v837_v17, %s2741_s3 }
0x107f   :  { %v840_v21 = vpop.permute.xlu1 %839 }
0x1080   :  { %843 = vst.msk [vmem:[#allocation2 + $0x28] sm:$0xff] %vm195_vm3, %v840_v21  ;;  %2362 = vmatmul.mubr.msk.f32.vlgmr.msra.gmra.mrb[12].mxu0 %vm195_vm3, %v840_v21 }
0x1081   :  { %2545 = vmatpush3.bf16.msra.mxu0 %v2542_v14  ;;  %2383 = vmatprep.mubr.msk.f32.mxu0 %vm195_vm3, %v1062_v22 }
0x1082   :  { %2547 = vmatprep.subr.bf16.mxu0 %v2546_v20 }
0x1085   :  { %2549 = vmatpush3.bf16.msra.mxu0 %v2546_v20 }
0x1086   :  { %2562 = vmatprep.subr.bf16.mxu0 %v2737_v0 }
0x1087   :  { %v1067_v27 = vld [vmem:[#allocation2 + $0x28] sm:$0xff] }
0x1088   :  { %2384 = vmatmul.mubr.msk.f32.vlgmr.msra.gmra.mrb[14].mxu0 %vm195_vm3, %v1063_v23 }
0x1089   :  { %2386 = vmatprep.mubr.msk.f32.mxu0 %vm195_vm3, %v1064_v24  ;;  %2564 = vmatpush3.bf16.msra.mxu0 %v2995_v50 }
0x108a   :  { %2565 = vmatprep.subr.bf16.mxu0 %v2737_v0 }
0x108c   :  { %2387 = vmatmul.mubr.msk.f32.gmra.mrb[16].mxu0 %vm195_vm3, %v1065_v25 }
0x108d   :  { %2389 = vmatprep.mubr.msk.f32.mxu0 %vm195_vm3, %v1066_v26  ;;  %2567 = vmatpush3.bf16.msra.mxu0 %v3005_v53 }
0x108e   :  { %2574 = vmatprep.subr.bf16.mxu0 %v2737_v0 }
0x1090   :  { %2390 = vmatmul.mubr.msk.f32.gmra.mrb[18].mxu0 %vm195_vm3, %v1067_v27 }
0x1153   :  { %v918_v29 = vpop.f32.mrb[12].mxu0 }
0x1154   :  { %v922_v30 = vadd.f32 %v918_v29, %v174_v28  ;;  %v2363_v31 = vpop.f32.mrb[13].mxu0 }
0x1156   :  { %2657 = vtanh.f32 %v922_v30  ;;  %v2138_v39 = vmul.f32 -1.442695, %v922_v30 }
0x1158   :  { %2659 = vpow2.f32 %v2138_v39 }
0x115b   :  { %v2973_v32 = vpop.f32.mrb[14].mxu0 }
0x115c   :  { %v1171_v33 = vpop.f32.mrb[15].mxu0 }
0x115d   :  { %v1172_v2 = vadd.f32 %v3031_v4, %v1171_v33 }
0x115f   :  { %v2975_v34 = vpop.f32.mrb[16].mxu0 }
0x1160   :  { %v2658_v35 = vpop.eup %2657  ;;  %v2977_v36 = vpop.f32.mrb[17].mxu0 }
0x1161   :  { %932 = vrot.lane.b32.xlu0 %v2658_v35, %s2740_s23  ;;  %v1177_v35 = vadd.f32 %v2973_v32, %v3031_v4 }
0x1162   :  { %v2660_v60 = vpop.eup %2659 }
0x1163   :  { %v2980_v37 = vpop.f32.mrb[18].mxu0  ;;  %v926_v40 = vadd.f32 1.0, %v2660_v60 }
0x1164   :  { %v2982_v38 = vpop.f32.mrb[19].mxu0 }
0x1165   :  { %2661 = vrcp.f32 %v926_v40 }
0x116f   :  { %v2662_v41 = vpop.eup %2661 }
0x1170   :  { %v930_v44 = vmul.f32 %v2662_v41, %v831_v57 }
0x11d3   :  { %v933_v42 = vpop.permute.xlu0 %932 }
0x11d4   :  { %v935_v43 = vmul.f32 %v2662_v41, %v933_v42 }
0x11d6   :  { %937 = vrot.lane.b32.xlu1 %v935_v43, %s2741_s3 }
0x1248   :  { %v938_v45 = vpop.permute.xlu1 %937 }
0x1249   :  { %v2985_v46 = vadd.f32 %v938_v45, %v930_v44 }
0x124b   :  { %2663 = vtanh.f32 %v2985_v46 }
0x1255   :  { %v2664_v47 = vpop.eup %2663 }
0x1256   :  { %943 = vrot.lane.b32.xlu0 %v2664_v47, %s2740_s23 }
0x12c8   :  { %v944_v54 = vpop.permute.xlu0 %943 }
0x12c9   :  { %v946_v55 = vmul.f32 %v2662_v41, %v944_v54 }
0x12cb   :  { %948 = vrot.lane.b32.xlu1 %v946_v55, %s2741_s3 }
0x133d   :  { %v949_v56 = vpop.permute.xlu1 %948 }
0x133e   :  { %952 = vst.msk [vmem:[#allocation2 + $0x30] sm:$0xff] %vm195_vm3, %v949_v56  ;;  %2373 = vmatmul.mubr.msk.f32.vlgmr.msra.gmra.mrb[8].mxu1 %vm195_vm3, %v949_v56 }
0x133f   :  { %2552 = vmatpush3.bf16.msra.mxu1 %v2995_v50  ;;  %2403 = vmatprep.mubr.msk.f32.mxu1 %vm2738_vm2, %v2739_v8 }
0x1340   :  { %2553 = vmatprep.subr.bf16.mxu1 %v2737_v0 }
0x1343   :  { %2555 = vmatpush3.bf16.msra.mxu1 %v3005_v53 }
0x1344   :  { %2556 = vmatprep.subr.bf16.mxu1 %v2737_v0 }
0x1345   :  { %v1068_v58 = vld [vmem:[#allocation2 + $0x30] sm:$0xff] }
0x1346   :  { %2404 = vmatmul.mubr.f32.vlgmr.msra.gmra.mrb[10].mxu1 %v2739_v8  ;;  %2392 = vmatprep.mubr.msk.f32.mxu0 %vm195_vm3, %v1068_v58 }
0x1347   :  { %2558 = vmatpush3.bf16.msra.mxu1 %v2995_v50  ;;  %2414 = vmatprep.mubr.msk.f32.mxu1 %vm2738_vm2, %v2739_v8 }
0x1348   :  { %2559 = vmatprep.subr.bf16.mxu1 %v2737_v0 }
0x134b   :  { %2561 = vmatpush3.bf16.msra.mxu1 %v3005_v53 }
0x134c   :  { %2568 = vmatprep.subr.bf16.mxu1 %v2737_v0 }
0x1411   :  { %v1027_v62 = vpop.f32.mrb[8].mxu1 }
0x1412   :  { %v1031_v63 = vadd.f32 %v1027_v62, %v179_v61  ;;  %v2374_v1 = vpop.f32.mrb[9].mxu1 }
0x1414   :  { %v2140_v18 = vmul.f32 -1.442695, %v1031_v63 }
0x1419   :  { %v1289_v3 = vpop.f32.mrb[10].mxu1 }
0x141a   :  { %v1293_v5 = vadd.f32 %v1289_v3, %v1172_v2  ;;  %v2405_v6 = vpop.f32.mrb[11].mxu1 }
0x141c   :  { %2665 = vtanh.f32 %v1293_v5  ;;  %v2150_v7 = vmul.f32 -1.442695, %v1293_v5 }
0x141e   :  { %2667 = vpow2.f32 %v2150_v7 }
0x1426   :  { %v2666_v10 = vpop.eup %2665 }
0x1427   :  { %1303 = vrot.lane.b32.xlu0 %v2666_v10, %s2740_s23 }
0x1428   :  { %v2668_v12 = vpop.eup %2667 }
0x1429   :  { %v1297_v59 = vadd.f32 1.0, %v2668_v12 }
0x142b   :  { %2669 = vrcp.f32 %v1297_v59 }
0x1435   :  { %v2670_v9 = vpop.eup %2669 }
0x1436   :  { %v1301_v13 = vmul.f32 0.0, %v2670_v9 }
0x1499   :  { %v1304_v57 = vpop.permute.xlu0 %1303 }
0x149a   :  { %v1306_v11 = vmul.f32 %v2670_v9, %v1304_v57 }
0x149c   :  { %1308 = vrot.lane.b32.xlu1 %v1306_v11, %s2741_s3 }
0x150e   :  { %v1309_v14 = vpop.permute.xlu1 %1308 }
0x150f   :  { %v1311_v15 = vadd.f32 %v1309_v14, %v1301_v13 }
0x1511   :  { %2671 = vtanh.f32 %v1311_v15 }
0x1512   :  { %2673 = vtanh.f32 %v1031_v63  ;;  %v1182_v63 = vadd.f32 %v3031_v4, %v2977_v36 }
0x1513   :  { %2675 = vpow2.f32 %v2140_v18 }
0x151b   :  { %v2672_v16 = vpop.eup %2671 }
0x151c   :  { %1314 = vrot.lane.b32.xlu0 %v2672_v16, %s2740_s23  ;;  %v2674_v17 = vpop.eup %2673 }
0x151d   :  { %v2676_v19 = vpop.eup %2675 }
0x151e   :  { %v1035_v20 = vadd.f32 1.0, %v2676_v19 }
0x1520   :  { %1041 = vrot.lane.b32.xlu0 %v2674_v17, %s2740_s23  ;;  %2677 = vrcp.f32 %v1035_v20  ;;  %v1187_v17 = vadd.f32 %v2975_v34, %v3031_v4 }
0x152a   :  { %v2678_v23 = vpop.eup %2677 }
0x152b   :  { %v1039_v27 = vmul.f32 %v2678_v23, %v2985_v46 }
0x158e   :  { %v1315_v21 = vpop.permute.xlu0 %1314 }
0x158f   :  { %v1317_v22 = vmul.f32 %v2670_v9, %v1315_v21 }
0x1591   :  { %1320 = vrot.lane.b32.xlu1 %v1317_v22, %s2741_s3 }
0x1592   :  { %v1042_v24 = vpop.permute.xlu0 %1041 }
0x1593   :  { %v1044_v25 = vmul.f32 %v2678_v23, %v1042_v24 }
0x1595   :  { %1046 = vrot.lane.b32.xlu0 %v1044_v25, %s2741_s3 }
0x1603   :  { %v1321_v26 = vpop.permute.xlu1 %1320 }
0x1604   :  { %2415 = vmatmul.mubr.msk.f32.vlgmr.msra.gmra.mrb[12].mxu1 %vm195_vm3, %v1321_v26 }
0x1605   :  { %2570 = vmatpush3.bf16.msra.mxu1 %v2995_v50  ;;  %2436 = vmatprep.mubr.msk.f32.mxu1 %vm2738_vm2, %v2739_v8 }
0x1606   :  { %2571 = vmatprep.subr.bf16.mxu1 %v2737_v0 }
0x1607   :  { %v1047_v28 = vpop.permute.xlu0 %1046 }
0x1608   :  { %v1049_v29 = vadd.f32 %v1047_v28, %v1039_v27 }
0x1609   :  { %2573 = vmatpush3.bf16.msra.mxu1 %v3005_v53 }
0x160a   :  { %2679 = vtanh.f32 %v1049_v29  ;;  %2580 = vmatprep.subr.bf16.mxu1 %v2737_v0 }
0x1614   :  { %v2680_v30 = vpop.eup %2679 }
0x1615   :  { %1052 = vrot.lane.b32.xlu0 %v2680_v30, %s2740_s23 }
0x1687   :  { %v1053_v31 = vpop.permute.xlu0 %1052 }
0x1688   :  { %v1055_v33 = vmul.f32 %v2678_v23, %v1053_v31 }
0x168a   :  { %1057 = vrot.lane.b32.xlu0 %v1055_v33, %s2741_s3 }
0x16d7   :  { %v1390_v39 = vpop.f32.mrb[12].mxu1 }
0x16d8   :  { %v1394_v60 = vadd.f32 %v1390_v39, %v1177_v35  ;;  %v2416_v40 = vpop.f32.mrb[13].mxu1  ;;  %v1192_v39 = vadd.f32 %v3031_v4, %v2982_v38 }
0x16da   :  { %2681 = vtanh.f32 %v1394_v60  ;;  %v2152_v44 = vmul.f32 -1.442695, %v1394_v60 }
0x16dc   :  { %2683 = vpow2.f32 %v2152_v44 }
0x16e4   :  { %v2682_v41 = vpop.eup %2681 }
0x16e5   :  { %1404 = vrot.lane.b32.xlu1 %v2682_v41, %s2740_s23 }
0x16e6   :  { %v2684_v45 = vpop.eup %2683 }
0x16e7   :  { %v1398_v32 = vadd.f32 1.0, %v2684_v45 }
0x16e9   :  { %2685 = vrcp.f32 %v1398_v32 }
0x16f3   :  { %v2686_v46 = vpop.eup %2685 }
0x16f4   :  { %v1402_v49 = vmul.f32 %v2686_v46, %v1311_v15 }
0x16fc   :  { %v1058_v42 = vpop.permute.xlu0 %1057 }
0x16fd   :  { %1061 = vst.msk [vmem:[#allocation2 + $0x38] sm:$0xff] %vm195_vm3, %v1058_v42 }
0x1704   :  { %v1069_v43 = vld [vmem:[#allocation2 + $0x38] sm:$0xff] }
0x1705   :  { %2393 = vmatmul.mubr.msk.f32.gmra.mrb[20].mxu0 %vm195_vm3, %v1069_v43 }
0x1706   :  { %2425 = vmatprep.mubr.msk.f32.mxu0 %vm2738_vm2, %v2739_v8 }
0x1757   :  { %v1405_v47 = vpop.permute.xlu1 %1404 }
0x1758   :  { %v1407_v48 = vmul.f32 %v2686_v46, %v1405_v47 }
0x175a   :  { %1409 = vrot.lane.b32.xlu1 %v1407_v48, %s2741_s3 }
0x17cc   :  { %v1410_v51 = vpop.permute.xlu1 %1409 }
0x17cd   :  { %v1412_v52 = vadd.f32 %v1410_v51, %v1402_v49 }
0x17cf   :  { %2687 = vtanh.f32 %v1412_v52 }
0x17d8   :  { %v3058_v54 = vpop.f32.mrb[20].mxu0 }
0x17d9   :  { %v2688_v55 = vpop.eup %2687  ;;  %v3060_v56 = vpop.f32.mrb[21].mxu0 }
0x17da   :  { %1415 = vrot.lane.b32.xlu1 %v2688_v55, %s2740_s23 }
0x184c   :  { %v1416_v58 = vpop.permute.xlu1 %1415 }
0x184d   :  { %v1418_v61 = vmul.f32 %v2686_v46, %v1416_v58 }
0x184f   :  { %1421 = vrot.lane.b32.xlu1 %v1418_v61, %s2741_s3  ;;  %v1197_v61 = vadd.f32 %v2980_v37, %v3031_v4 }
0x18c1   :  { %v1422_v62 = vpop.permute.xlu1 %1421 }
0x18c2   :  { %2426 = vmatmul.mubr.msk.f32.vlgmr.msra.gmra.mrb[22].mxu0 %vm195_vm3, %v1422_v62 }
0x18c3   :  { %2576 = vmatpush3.bf16.msra.mxu0 %v2995_v50  ;;  %2447 = vmatprep.mubr.msk.f32.mxu0 %vm2738_vm2, %v2739_v8 }
0x18c4   :  { %2577 = vmatprep.subr.bf16.mxu0 %v2737_v0 }
0x18c7   :  { %2579 = vmatpush3.bf16.msra.mxu0 %v3005_v53 }
0x18c8   :  { %2586 = vmatprep.subr.bf16.mxu0 %v2737_v0 }
0x1995   :  { %v1491_v1 = vpop.f32.mrb[22].mxu0 }
0x1996   :  { %v1495_v2 = vadd.f32 %v1491_v1, %v1182_v63  ;;  %v2427_v3 = vpop.f32.mrb[23].mxu0 }
0x1998   :  { %2689 = vtanh.f32 %v1495_v2  ;;  %v2154_v6 = vmul.f32 -1.442695, %v1495_v2 }
0x199a   :  { %2691 = vpow2.f32 %v2154_v6 }
0x19a2   :  { %v2690_v5 = vpop.eup %2689 }
0x19a3   :  { %1505 = vrot.lane.b32.xlu0 %v2690_v5, %s2740_s23 }
0x19a4   :  { %v2692_v10 = vpop.eup %2691 }
0x19a5   :  { %v1499_v7 = vadd.f32 1.0, %v2692_v10 }
0x19a7   :  { %2693 = vrcp.f32 %v1499_v7 }
0x19b1   :  { %v2694_v12 = vpop.eup %2693 }
0x19b2   :  { %v1503_v57 = vmul.f32 %v2694_v12, %v1412_v52 }
0x1a15   :  { %v1506_v59 = vpop.permute.xlu0 %1505 }
0x1a16   :  { %v1508_v9 = vmul.f32 %v2694_v12, %v1506_v59 }
0x1a18   :  { %1510 = vrot.lane.b32.xlu1 %v1508_v9, %s2741_s3 }
0x1a8a   :  { %v1511_v11 = vpop.permute.xlu1 %1510 }
0x1a8b   :  { %v1513_v36 = vadd.f32 %v1511_v11, %v1503_v57 }
0x1a8d   :  { %2695 = vtanh.f32 %v1513_v36 }
0x1a97   :  { %v2696_v13 = vpop.eup %2695 }
0x1a98   :  { %1516 = vrot.lane.b32.xlu0 %v2696_v13, %s2740_s23 }
0x1b0a   :  { %v1517_v14 = vpop.permute.xlu0 %1516 }
0x1b0b   :  { %v1519_v15 = vmul.f32 %v2694_v12, %v1517_v14 }
0x1b0d   :  { %1522 = vrot.lane.b32.xlu1 %v1519_v15, %s2741_s3 }
0x1b7f   :  { %v1523_v16 = vpop.permute.xlu1 %1522 }
0x1b80   :  { %2437 = vmatmul.mubr.msk.f32.vlgmr.msra.gmra.mrb[14].mxu1 %vm195_vm3, %v1523_v16 }
0x1b81   :  { %2582 = vmatpush3.bf16.msra.mxu1 %v2995_v50  ;;  %2458 = vmatprep.mubr.msk.f32.mxu1 %vm2738_vm2, %v2739_v8 }
0x1b82   :  { %2583 = vmatprep.subr.bf16.mxu1 %v2737_v0 }
0x1b85   :  { %2585 = vmatpush3.bf16.msra.mxu1 %v3005_v53 }
0x1b86   :  { %2592 = vmatprep.subr.bf16.mxu1 %v2737_v0 }
0x1c53   :  { %v1592_v18 = vpop.f32.mrb[14].mxu1 }
0x1c54   :  { %v1596_v19 = vadd.f32 %v1592_v18, %v1187_v17  ;;  %v2438_v20 = vpop.f32.mrb[15].mxu1 }
0x1c56   :  { %2697 = vtanh.f32 %v1596_v19  ;;  %v2156_v22 = vmul.f32 -1.442695, %v1596_v19 }
0x1c58   :  { %2699 = vpow2.f32 %v2156_v22 }
0x1c60   :  { %v2698_v21 = vpop.eup %2697 }
0x1c61   :  { %1606 = vrot.lane.b32.xlu0 %v2698_v21, %s2740_s23 }
0x1c62   :  { %v2700_v23 = vpop.eup %2699 }
0x1c63   :  { %v1600_v24 = vadd.f32 1.0, %v2700_v23 }
0x1c65   :  { %2701 = vrcp.f32 %v1600_v24 }
0x1c6f   :  { %v2702_v25 = vpop.eup %2701 }
0x1c70   :  { %v1604_v28 = vmul.f32 %v2702_v25, %v1513_v36  ;;  %v1202_v36 = vadd.f32 %v3031_v4, %v3060_v56 }
0x1cd3   :  { %v1607_v26 = vpop.permute.xlu0 %1606 }
0x1cd4   :  { %v1609_v27 = vmul.f32 %v2702_v25, %v1607_v26 }
0x1cd6   :  { %1611 = vrot.lane.b32.xlu1 %v1609_v27, %s2741_s3 }
0x1d48   :  { %v1612_v29 = vpop.permute.xlu1 %1611 }
0x1d49   :  { %v1614_v34 = vadd.f32 %v1612_v29, %v1604_v28  ;;  %v1207_v28 = vadd.f32 %v3058_v54, %v3031_v4  ;;  %v2025_v54 = vld [vmem:[%s3158_s7] sm:$0xff] }
0x1d4b   :  { %2703 = vtanh.f32 %v1614_v34 }
0x1d55   :  { %v2704_v30 = vpop.eup %2703 }
0x1d56   :  { %1617 = vrot.lane.b32.xlu0 %v2704_v30, %s2740_s23 }
0x1dc8   :  { %v1618_v31 = vpop.permute.xlu0 %1617 }
0x1dc9   :  { %v1620_v33 = vmul.f32 %v2702_v25, %v1618_v31 }
0x1dcb   :  { %1623 = vrot.lane.b32.xlu1 %v1620_v33, %s2741_s3 }
0x1e3d   :  { %v1624_v35 = vpop.permute.xlu1 %1623 }
0x1e3e   :  { %2448 = vmatmul.mubr.msk.f32.vlgmr.msra.gmra.mrb[24].mxu0 %vm195_vm3, %v1624_v35 }
0x1e3f   :  { %2588 = vmatpush3.bf16.msra.mxu0 %v2995_v50  ;;  %2469 = vmatprep.mubr.msk.f32.mxu0 %vm2738_vm2, %v2739_v8 }
0x1e40   :  { %2589 = vmatprep.subr.bf16.mxu0 %v2737_v0 }
0x1e43   :  { %2591 = vmatpush3.bf16.msra.mxu0 %v3005_v53 }
0x1e44   :  { %2598 = vmatprep.subr.bf16.mxu0 %v2737_v0 }
0x1f11   :  { %v1693_v60 = vpop.f32.mrb[24].mxu0 }
0x1f12   :  { %v1697_v40 = vadd.f32 %v1693_v60, %v1192_v39  ;;  %v2449_v41 = vpop.f32.mrb[25].mxu0 }
0x1f14   :  { %2705 = vtanh.f32 %v1697_v40  ;;  %v2158_v43 = vmul.f32 -1.442695, %v1697_v40 }
0x1f16   :  { %2707 = vpow2.f32 %v2158_v43 }
0x1f1e   :  { %v2706_v42 = vpop.eup %2705 }
0x1f1f   :  { %1707 = vrot.lane.b32.xlu0 %v2706_v42, %s2740_s23 }
0x1f20   :  { %v2708_v44 = vpop.eup %2707 }
0x1f21   :  { %v1701_v45 = vadd.f32 1.0, %v2708_v44  ;;  %v2026_v44 = vld [vmem:[%s3158_s7 + $0x8] sm:$0xff] }
0x1f23   :  { %2709 = vrcp.f32 %v1701_v45  ;;  %v2027_v45 = vld [vmem:[%s3158_s7 + $0x10] sm:$0xff] }
0x1f2d   :  { %v2710_v32 = vpop.eup %2709 }
0x1f2e   :  { %v1705_v48 = vmul.f32 %v2710_v32, %v1614_v34 }
0x1f91   :  { %v1708_v46 = vpop.permute.xlu0 %1707 }
0x1f92   :  { %v1710_v47 = vmul.f32 %v2710_v32, %v1708_v46  ;;  %v2028_v46 = vld [vmem:[%s3158_s7 + $0x18] sm:$0xff] }
0x1f94   :  { %1712 = vrot.lane.b32.xlu1 %v1710_v47, %s2741_s3  ;;  %v2602_v47 = vpack.c.bf16 %v2028_v46, %v2027_v45 }
0x2006   :  { %v1713_v49 = vpop.permute.xlu1 %1712 }
0x2007   :  { %v1715_v38 = vadd.f32 %v1713_v49, %v1705_v48 }
0x2009   :  { %2711 = vtanh.f32 %v1715_v38 }
0x2013   :  { %v2712_v51 = vpop.eup %2711 }
0x2014   :  { %1718 = vrot.lane.b32.xlu0 %v2712_v51, %s2740_s23 }
0x2086   :  { %v1719_v52 = vpop.permute.xlu0 %1718 }
0x2087   :  { %v1721_v55 = vmul.f32 %v2710_v32, %v1719_v52  ;;  %v2599_v32 = vpack.c.bf16 %v2026_v44, %v2025_v54  ;;  %v2165_v52 = vld [vmem:[%s3159_s8] ss:$0 sm:$0xff] }
0x2089   :  { %1724 = vrot.lane.b32.xlu1 %v1721_v55, %s2741_s3 }
0x20fb   :  { %v1725_v58 = vpop.permute.xlu1 %1724 }
0x20fc   :  { %2459 = vmatmul.mubr.msk.f32.vlgmr.msra.gmra.mrb[16].mxu1 %vm195_vm3, %v1725_v58 }
0x20fd   :  { %2594 = vmatpush3.bf16.msra.mxu1 %v2995_v50  ;;  %2480 = vmatprep.mubr.msk.f32.mxu1 %vm2738_vm2, %v2739_v8 }
0x20fe   :  { %2595 = vmatprep.subr.bf16.mxu1 %v2737_v0 }
0x2101   :  { %2597 = vmatpush3.bf16.msra.mxu1 %v3005_v53 }
0x21cf   :  { %v1794_v62 = vpop.f32.mrb[16].mxu1 }
0x21d0   :  { %v1798_v63 = vadd.f32 %v1794_v62, %v1197_v61  ;;  %v2460_v1 = vpop.f32.mrb[17].mxu1 }
0x21d2   :  { %2713 = vtanh.f32 %v1798_v63  ;;  %v2160_v3 = vmul.f32 -1.442695, %v1798_v63 }
0x21d4   :  { %2715 = vpow2.f32 %v2160_v3 }
0x21dc   :  { %v2714_v2 = vpop.eup %2713 }
0x21dd   :  { %1808 = vrot.lane.b32.xlu0 %v2714_v2, %s2740_s23 }
0x21de   :  { %v2716_v50 = vpop.eup %2715 }
0x21df   :  { %v1802_v5 = vadd.f32 1.0, %v2716_v50 }
0x21e1   :  { %2717 = vrcp.f32 %v1802_v5 }
0x21eb   :  { %v2718_v6 = vpop.eup %2717 }
0x21ec   :  { %v1806_v53 = vmul.f32 %v2718_v6, %v1715_v38 }
0x224f   :  { %v1809_v10 = vpop.permute.xlu0 %1808 }
0x2250   :  { %v1811_v7 = vmul.f32 %v2718_v6, %v1809_v10 }
0x2252   :  { %1813 = vrot.lane.b32.xlu1 %v1811_v7, %s2741_s3 }
0x22c4   :  { %v1814_v12 = vpop.permute.xlu1 %1813 }
0x22c5   :  { %v1816_v37 = vadd.f32 %v1814_v12, %v1806_v53 }
0x22c7   :  { %2719 = vtanh.f32 %v1816_v37 }
0x22d1   :  { %v2720_v59 = vpop.eup %2719 }
0x22d2   :  { %1819 = vrot.lane.b32.xlu0 %v2720_v59, %s2740_s23 }
0x2344   :  { %v1820_v9 = vpop.permute.xlu0 %1819 }
0x2345   :  { %v1822_v57 = vmul.f32 %v2718_v6, %v1820_v9 }
0x2347   :  { %1825 = vrot.lane.b32.xlu1 %v1822_v57, %s2741_s3 }
0x23b9   :  { %v1826_v11 = vpop.permute.xlu1 %1825 }
0x23ba   :  { %2470 = vmatmul.mubr.msk.f32.vlgmr.msra.gmra.mrb[26].mxu0 %vm195_vm3, %v1826_v11 }
0x23bb   :  { %2491 = vmatprep.mubr.msk.f32.mxu0 %vm2738_vm2, %v2739_v8  ;;  %2600 = vmatpush3.bf16.msra.mxu0 %v2599_v32 }
0x23bc   :  { %2601 = vmatprep.subr.bf16.mxu0 %v2737_v0 }
0x23bf   :  { %2603 = vmatpush3.bf16.msra.mxu0 %v2602_v47 }
0x248d   :  { %v1895_v13 = vpop.f32.mrb[26].mxu0 }
0x248e   :  { %v1899_v14 = vadd.f32 %v1895_v13, %v1202_v36  ;;  %v2471_v15 = vpop.f32.mrb[27].mxu0 }
0x2490   :  { %2721 = vtanh.f32 %v1899_v14  ;;  %v2162_v17 = vmul.f32 -1.442695, %v1899_v14 }
0x2492   :  { %2723 = vpow2.f32 %v2162_v17 }
0x249a   :  { %v2722_v16 = vpop.eup %2721 }
0x249b   :  { %1909 = vrot.lane.b32.xlu0 %v2722_v16, %s2740_s23 }
0x249c   :  { %v2724_v18 = vpop.eup %2723 }
0x249d   :  { %v1903_v19 = vadd.f32 1.0, %v2724_v18 }
0x249f   :  { %2725 = vrcp.f32 %v1903_v19 }
0x24a9   :  { %v2726_v20 = vpop.eup %2725 }
0x24aa   :  { %v1907_v8 = vmul.f32 %v2726_v20, %v1816_v37 }
0x250d   :  { %v1910_v21 = vpop.permute.xlu0 %1909 }
0x250e   :  { %v1912_v22 = vmul.f32 %v2726_v20, %v1910_v21 }
0x2510   :  { %1914 = vrot.lane.b32.xlu1 %v1912_v22, %s2741_s3 }
0x2582   :  { %v1915_v23 = vpop.permute.xlu1 %1914 }
0x2583   :  { %v1917_v56 = vadd.f32 %v1915_v23, %v1907_v8 }
0x2585   :  { %2727 = vtanh.f32 %v1917_v56 }
0x258f   :  { %v2728_v24 = vpop.eup %2727 }
0x2590   :  { %1920 = vrot.lane.b32.xlu0 %v2728_v24, %s2740_s23 }
0x2602   :  { %v1921_v25 = vpop.permute.xlu0 %1920 }
0x2603   :  { %v1923_v26 = vmul.f32 %v2726_v20, %v1921_v25 }
0x2605   :  { %1926 = vrot.lane.b32.xlu1 %v1923_v26, %s2741_s3 }
0x2677   :  { %v1927_v27 = vpop.permute.xlu1 %1926 }
0x2678   :  { %2481 = vmatmul.mubr.msk.f32.vlgmr.msra.gmra.mrb[18].mxu1 %vm195_vm3, %v1927_v27 }
0x274b   :  { %v1996_v29 = vpop.f32.mrb[18].mxu1 }
0x274c   :  { %v2000_v34 = vadd.f32 %v1996_v29, %v1207_v28  ;;  %v2482_v30 = vpop.f32.mrb[19].mxu1 }
0x274e   :  { %2729 = vtanh.f32 %v2000_v34  ;;  %v2164_v33 = vmul.f32 -1.442695, %v2000_v34 }
0x2750   :  { %2731 = vpow2.f32 %v2164_v33 }
0x2758   :  { %v2730_v31 = vpop.eup %2729 }
0x2759   :  { %2010 = vrot.lane.b32.xlu0 %v2730_v31, %s2740_s23 }
0x275a   :  { %v2732_v35 = vpop.eup %2731 }
0x275b   :  { %v2004_v39 = vadd.f32 1.0, %v2732_v35 }
0x275d   :  { %2733 = vrcp.f32 %v2004_v39 }
0x2767   :  { %v2734_v60 = vpop.eup %2733 }
0x2768   :  { %v2008_v42 = vmul.f32 %v2734_v60, %v1917_v56 }
0x27cb   :  { %v2011_v40 = vpop.permute.xlu0 %2010 }
0x27cc   :  { %v2013_v41 = vmul.f32 %v2734_v60, %v2011_v40 }
0x27ce   :  { %2015 = vrot.lane.b32.xlu1 %v2013_v41, %s2741_s3 }
0x2840   :  { %v2016_v43 = vpop.permute.xlu1 %2015 }
0x2841   :  { %v2018_v4 = vadd.f32 %v2016_v43, %v2008_v42 }
0x2843   :  { %2735 = vtanh.f32 %v2018_v4 }
0x284d   :  { %v2736_v48 = vpop.eup %2735 }
0x284e   :  { %2021 = vrot.lane.b32.xlu0 %v2736_v48, %s2740_s23 }
0x28c0   :  { %v2022_v49 = vpop.permute.xlu0 %2021 }
0x28c1   :  { %v2024_v38 = vmul.f32 %v2734_v60, %v2022_v49 }
0x28c3   :  { %2037 = vrot.lane.b32.xlu1 %v2024_v38, %s2741_s3 }
0x2935   :  { %v2038_v51 = vpop.permute.xlu1 %2037 }
0x2936   :  { %2492 = vmatmul.mubr.msk.f32.vlgmr.msra.gmra.mrb[28].mxu0 %vm195_vm3, %v2038_v51 }
0x2a09   :  { %v2107_v55 = vpop.f32.mrb[28].mxu0 }
0x2a0a   :  { %v2108_v58 = vadd.f32 %v2165_v52, %v2107_v55  ;;  %v2493_v61 = vpop.f32.mrb[29].mxu0 }
0x2a0c   :  { %2111 = vst [vmem:[%s3160_s9] sm:$0xff] %v2108_v58 }

</bundles_post_ra>
